<compile_context>
chip_gen: v6e
topology: v6e:2x2x1
jax: 0.10.0
libtpu: 0.0.40
codegen_flags: <defaults>
</compile_context>

<pallas_src>
from functools import partial

import jax
import jax.numpy as jnp
from jax.experimental import pallas as pl
from jax.experimental.pallas import tpu as pltpu


def _attention_kernel(x_ref, wq_ref, wk_ref, wv_ref, wp_ref, bp_ref, o_ref,
                      *, num_heads):
    x = x_ref[0]                                  # (N, C) for this batch element
    N, C = x.shape
    hd = C // num_heads

    xb = x.astype(jnp.bfloat16)
    # NOTE: softmax scale is already folded into wq by the wrapper.
    q = jnp.dot(xb, wq_ref[...], preferred_element_type=jnp.float32)   # (N, C)
    k = jnp.dot(xb, wk_ref[...], preferred_element_type=jnp.float32)   # (N, C)
    v = jnp.dot(xb, wv_ref[...], preferred_element_type=jnp.float32)   # (N, C)

    qh = q.reshape(N, num_heads, hd)
    kh = k.reshape(N, num_heads, hd)
    vh = v.reshape(N, num_heads, hd)

    # Batched over heads: (heads, N, N). No per-head loop, no explicit k.T.
    s = jnp.einsum("qhd,khd->hqk",
                   qh.astype(jnp.bfloat16), kh.astype(jnp.bfloat16),
                   preferred_element_type=jnp.float32)
    s = s - jnp.max(s, axis=-1, keepdims=True)          # numerically stable softmax
    p = jnp.exp(s)
    p = p * pl.reciprocal(jnp.sum(p, axis=-1, keepdims=True), approx=True)

    o = jnp.einsum("hqk,khd->qhd",
                   p.astype(jnp.bfloat16), vh.astype(jnp.bfloat16),
                   preferred_element_type=jnp.float32)   # (N, heads, hd)
    o = o.reshape(N, C)

    out = jnp.dot(o.astype(jnp.bfloat16), wp_ref[...],
                  preferred_element_type=jnp.float32)
    o_ref[0] = out + bp_ref[0]


def attention(x, params, *, num_heads, sr_ratio=1):
    assert sr_ratio == 1, "sr_ratio > 1 path not implemented"
    B, N, C = x.shape
    hd = C // num_heads
    scale = hd ** -0.5

    # One-time host-side weight prep: fold scale into Wq, split Wkv into Wk/Wv
    # (avoids lane-dim slices in-kernel), cast matmul weights to bf16.
    wq = (params["wq"] * scale).astype(jnp.bfloat16)
    wk = params["wkv"][:, :C].astype(jnp.bfloat16)
    wv = params["wkv"][:, C:].astype(jnp.bfloat16)
    wp = params["wp"].astype(jnp.bfloat16)
    bp = params["bp"]                                    # bias stays f32

    full = lambda shape: pl.BlockSpec(shape, lambda b: (0, 0))
    kernel = partial(_attention_kernel, num_heads=num_heads)
    return pl.pallas_call(
        kernel,
        out_shape=jax.ShapeDtypeStruct((B, N, C), jnp.float32),
        grid=(B,),
        in_specs=[
            pl.BlockSpec((1, N, C), lambda b: (b, 0, 0)),   # x
            full((C, C)),                                   # Wq (pre-scaled)
            full((C, C)),                                   # Wk
            full((C, C)),                                   # Wv
            full((C, C)),                                   # Wproj
            full((1, C)),                                   # bproj
        ],
        out_specs=pl.BlockSpec((1, N, C), lambda b: (b, 0, 0)),
        compiler_params=pltpu.CompilerParams(dimension_semantics=("parallel",)),
    )(x, wq, wk, wv, wp, bp)


# ------------------------- pure-JAX reference -------------------------------
def attention_ref(x, params, *, num_heads):
    B, N, C = x.shape
    hd = C // num_heads
    scale = hd ** -0.5
    q = (x @ params["wq"]).reshape(B, N, num_heads, hd).transpose(0, 2, 1, 3)
    kv = (x @ params["wkv"]).reshape(B, N, 2, num_heads, hd).transpose(2, 0, 3, 1, 4)
    k, v = kv[0], kv[1]
    attn = jax.nn.softmax(jnp.einsum("bhnd,bhmd->bhnm", q, k) * scale, axis=-1)
    out = jnp.einsum("bhnm,bhmd->bhnd", attn, v).transpose(0, 2, 1, 3).reshape(B, N, C)
    return out @ params["wp"] + params["bp"][0]


if __name__ == "__main__":
    # Small shapes consistent with the module: dim=32, num_heads=4, N=H*W=16
    B, H, W, C = 2, 4, 4, 32
    N = H * W
    num_heads = 4

    key = jax.random.PRNGKey(0)
    ks = jax.random.split(key, 5)
    f32 = jnp.float32
    params = {
        "wq":  0.02 * jax.random.normal(ks[0], (C, C), f32),
        "wkv": 0.02 * jax.random.normal(ks[1], (C, 2 * C), f32),
        "wp":  0.02 * jax.random.normal(ks[2], (C, C), f32),
        "bp":  0.02 * jax.random.normal(ks[3], (1, C), f32),
    }
    x = jax.random.normal(ks[4], (B, N, C), f32)

    out = jax.block_until_ready(attention(x, params, num_heads=num_heads))
    ref = attention_ref(x, params, num_heads=num_heads)

    assert out.shape == (B, N, C)
    max_err = float(jnp.max(jnp.abs(out - ref)))
    # bf16 matmul operands + approx reciprocal => loosened tolerance vs pure f32.
    assert jnp.allclose(out, ref, atol=1e-2, rtol=1e-2), max_err
    print("KERNEL_OK")
</pallas_src>

<mosaic_0001>
module attributes {stable_mosaic.version = 11 : i64} {
  func.func @_attention_kernel(%arg0: i32, %arg1: memref<1x16x32xf32, #tpu.memory_space<vmem>>, %arg2: memref<32x32xbf16, #tpu.memory_space<vmem>>, %arg3: memref<32x32xbf16, #tpu.memory_space<vmem>>, %arg4: memref<32x32xbf16, #tpu.memory_space<vmem>>, %arg5: memref<32x32xbf16, #tpu.memory_space<vmem>>, %arg6: memref<1x32xf32, #tpu.memory_space<vmem>>, %arg7: memref<1x16x32xf32, #tpu.memory_space<vmem>>) attributes {dimension_semantics = [#tpu.dimension_semantics<parallel>], iteration_bounds = array<i64: 2>, scalar_prefetch = 0 : i64, scratch_operands = 0 : i64, tpu.core_type = #tpu.core_type<tc>, window_params = [{transform_indices = @transform_0, window_bounds = array<i64: 1, 16, 32>}, {pipeline_mode = #tpu.pipeline_mode<synchronous>, transform_indices = @transform_1, window_bounds = array<i64: 32, 32>}, {pipeline_mode = #tpu.pipeline_mode<synchronous>, transform_indices = @transform_2, window_bounds = array<i64: 32, 32>}, {pipeline_mode = #tpu.pipeline_mode<synchronous>, transform_indices = @transform_3, window_bounds = array<i64: 32, 32>}, {pipeline_mode = #tpu.pipeline_mode<synchronous>, transform_indices = @transform_4, window_bounds = array<i64: 32, 32>}, {pipeline_mode = #tpu.pipeline_mode<synchronous>, transform_indices = @transform_5, window_bounds = array<i64: 1, 32>}, {transform_indices = @transform_6, window_bounds = array<i64: 1, 16, 32>}]} {
    %c0 = arith.constant 0 : index
    %c0_0 = arith.constant 0 : index
    %c0_1 = arith.constant 0 : index
    %0 = vector.load %arg1[%c0, %c0_0, %c0_1] : memref<1x16x32xf32, #tpu.memory_space<vmem>>, vector<1x16x32xf32>
    %1 = vector.shape_cast %0 : vector<1x16x32xf32> to vector<16x32xf32>
    %2 = arith.truncf %1 : vector<16x32xf32> to vector<16x32xbf16>
    %c0_2 = arith.constant 0 : index
    %c0_3 = arith.constant 0 : index
    %3 = vector.load %arg2[%c0_2, %c0_3] : memref<32x32xbf16, #tpu.memory_space<vmem>>, vector<32x32xbf16>
    %cst = arith.constant dense<0.000000e+00> : vector<16x32xf32>
    %4 = tpu.matmul %2, %3, %cst {dimension_numbers = #tpu.dot_dimension_numbers<[1], [0], [0], [1], [0, 0, 1, 1], [], []>} : vector<16x32xbf16>, vector<32x32xbf16>, vector<16x32xf32> -> vector<16x32xf32>
    %c0_4 = arith.constant 0 : index
    %c0_5 = arith.constant 0 : index
    %5 = vector.load %arg3[%c0_4, %c0_5] : memref<32x32xbf16, #tpu.memory_space<vmem>>, vector<32x32xbf16>
    %cst_6 = arith.constant dense<0.000000e+00> : vector<16x32xf32>
    %6 = tpu.matmul %2, %5, %cst_6 {dimension_numbers = #tpu.dot_dimension_numbers<[1], [0], [0], [1], [0, 0, 1, 1], [], []>} : vector<16x32xbf16>, vector<32x32xbf16>, vector<16x32xf32> -> vector<16x32xf32>
    %c0_7 = arith.constant 0 : index
    %c0_8 = arith.constant 0 : index
    %7 = vector.load %arg4[%c0_7, %c0_8] : memref<32x32xbf16, #tpu.memory_space<vmem>>, vector<32x32xbf16>
    %cst_9 = arith.constant dense<0.000000e+00> : vector<16x32xf32>
    %8 = tpu.matmul %2, %7, %cst_9 {dimension_numbers = #tpu.dot_dimension_numbers<[1], [0], [0], [1], [0, 0, 1, 1], [], []>} : vector<16x32xbf16>, vector<32x32xbf16>, vector<16x32xf32> -> vector<16x32xf32>
    %9 = vector.shape_cast %4 : vector<16x32xf32> to vector<16x4x8xf32>
    %10 = vector.shape_cast %6 : vector<16x32xf32> to vector<16x4x8xf32>
    %11 = vector.shape_cast %8 : vector<16x32xf32> to vector<16x4x8xf32>
    %12 = arith.truncf %9 : vector<16x4x8xf32> to vector<16x4x8xbf16>
    %13 = arith.truncf %10 : vector<16x4x8xf32> to vector<16x4x8xbf16>
    "tpu.trace_start"() <{level = 10 : i32, message = "qhd,khd->hqk"}> : () -> ()
    %cst_10 = arith.constant dense<0.000000e+00> : vector<4x16x16xf32>
    %14 = tpu.matmul %12, %13, %cst_10 {dimension_numbers = #tpu.dot_dimension_numbers<[2], [2], [0], [0], [0, 1, 0, 0, 1, 0], [1], [1]>} : vector<16x4x8xbf16>, vector<16x4x8xbf16>, vector<4x16x16xf32> -> vector<4x16x16xf32>
    "tpu.trace_stop"() : () -> ()
    %cst_11 = arith.constant dense<0xFF800000> : vector<4x16xf32>
    %15 = vector.multi_reduction <maximumf>, %14, %cst_11 [2] : vector<4x16x16xf32> to vector<4x16xf32>
    %16 = vector.shape_cast %15 : vector<4x16xf32> to vector<4x16x1xf32>
    %17 = vector.broadcast %16 : vector<4x16x1xf32> to vector<4x16x16xf32>
    %18 = arith.subf %14, %17 : vector<4x16x16xf32>
    %19 = math.exp %18 : vector<4x16x16xf32>
    %cst_12 = arith.constant dense<0.000000e+00> : vector<4x16xf32>
    %20 = vector.multi_reduction <add>, %19, %cst_12 [2] : vector<4x16x16xf32> to vector<4x16xf32>
    %21 = vector.shape_cast %20 : vector<4x16xf32> to vector<4x16x1xf32>
    %22 = tpu.reciprocal %21 {approx = true} : vector<4x16x1xf32> -> vector<4x16x1xf32>
    %23 = vector.broadcast %22 : vector<4x16x1xf32> to vector<4x16x16xf32>
    %24 = arith.mulf %19, %23 : vector<4x16x16xf32>
    %25 = arith.truncf %24 : vector<4x16x16xf32> to vector<4x16x16xbf16>
    %26 = arith.truncf %11 : vector<16x4x8xf32> to vector<16x4x8xbf16>
    "tpu.trace_start"() <{level = 10 : i32, message = "hqk,khd->qhd"}> : () -> ()
    %cst_13 = arith.constant dense<0.000000e+00> : vector<4x8x16xf32>
    %27 = tpu.matmul %26, %25, %cst_13 {dimension_numbers = #tpu.dot_dimension_numbers<[0], [2], [2], [1], [0, 1, 0, 2, 1, 1], [1], [0]>} : vector<16x4x8xbf16>, vector<4x16x16xbf16>, vector<4x8x16xf32> -> vector<4x8x16xf32>
    %28 = tpu.transpose %27, [2, 0, 1] : vector<4x8x16xf32> -> vector<16x4x8xf32>
    "tpu.trace_stop"() : () -> ()
    %29 = vector.shape_cast %28 : vector<16x4x8xf32> to vector<16x32xf32>
    %30 = arith.truncf %29 : vector<16x32xf32> to vector<16x32xbf16>
    %c0_14 = arith.constant 0 : index
    %c0_15 = arith.constant 0 : index
    %31 = vector.load %arg5[%c0_14, %c0_15] : memref<32x32xbf16, #tpu.memory_space<vmem>>, vector<32x32xbf16>
    %cst_16 = arith.constant dense<0.000000e+00> : vector<16x32xf32>
    %32 = tpu.matmul %30, %31, %cst_16 {dimension_numbers = #tpu.dot_dimension_numbers<[1], [0], [0], [1], [0, 0, 1, 1], [], []>} : vector<16x32xbf16>, vector<32x32xbf16>, vector<16x32xf32> -> vector<16x32xf32>
    %c0_17 = arith.constant 0 : index
    %c0_18 = arith.constant 0 : index
    %33 = vector.load %arg6[%c0_17, %c0_18] : memref<1x32xf32, #tpu.memory_space<vmem>>, vector<1x32xf32>
    %34 = vector.shape_cast %33 : vector<1x32xf32> to vector<32xf32>
    %35 = vector.shape_cast %34 : vector<32xf32> to vector<1x32xf32>
    %36 = vector.broadcast %35 : vector<1x32xf32> to vector<16x32xf32>
    %37 = arith.addf %32, %36 : vector<16x32xf32>
    %c0_19 = arith.constant 0 : index
    %c0_20 = arith.constant 0 : index
    %c0_21 = arith.constant 0 : index
    %38 = vector.load %arg7[%c0_19, %c0_20, %c0_21] : memref<1x16x32xf32, #tpu.memory_space<vmem>>, vector<1x16x32xf32>
    %39 = vector.shape_cast %38 : vector<1x16x32xf32> to vector<16x32xf32>
    %40 = vector.shape_cast %37 : vector<16x32xf32> to vector<1x16x32xf32>
    tpu.vector_store %arg7[%c0_19, %c0_20, %c0_21], %40 {strides = array<i32>} : memref<1x16x32xf32, #tpu.memory_space<vmem>>, vector<1x16x32xf32>,
    return
  }
  func.func @transform_0(%arg0: i32) -> (i32, i32, i32) {
    %c0_i32 = arith.constant 0 : i32
    %c0_i32_0 = arith.constant 0 : i32
    %c0_i32_1 = arith.constant 0 : i32
    return %arg0, %c0_i32, %c0_i32_0 : i32, i32, i32
  }
  func.func @transform_1(%arg0: i32) -> (i32, i32) {
    %c0_i32 = arith.constant 0 : i32
    %c0_i32_0 = arith.constant 0 : i32
    %c0_i32_1 = arith.constant 0 : i32
    return %c0_i32, %c0_i32_0 : i32, i32
  }
  func.func @transform_2(%arg0: i32) -> (i32, i32) {
    %c0_i32 = arith.constant 0 : i32
    %c0_i32_0 = arith.constant 0 : i32
    %c0_i32_1 = arith.constant 0 : i32
    return %c0_i32, %c0_i32_0 : i32, i32
  }
  func.func @transform_3(%arg0: i32) -> (i32, i32) {
    %c0_i32 = arith.constant 0 : i32
    %c0_i32_0 = arith.constant 0 : i32
    %c0_i32_1 = arith.constant 0 : i32
    return %c0_i32, %c0_i32_0 : i32, i32
  }
  func.func @transform_4(%arg0: i32) -> (i32, i32) {
    %c0_i32 = arith.constant 0 : i32
    %c0_i32_0 = arith.constant 0 : i32
    %c0_i32_1 = arith.constant 0 : i32
    return %c0_i32, %c0_i32_0 : i32, i32
  }
  func.func @transform_5(%arg0: i32) -> (i32, i32) {
    %c0_i32 = arith.constant 0 : i32
    %c0_i32_0 = arith.constant 0 : i32
    %c0_i32_1 = arith.constant 0 : i32
    return %c0_i32, %c0_i32_0 : i32, i32
  }
  func.func @transform_6(%arg0: i32) -> (i32, i32, i32) {
    %c0_i32 = arith.constant 0 : i32
    %c0_i32_0 = arith.constant 0 : i32
    %c0_i32_1 = arith.constant 0 : i32
    return %arg0, %c0_i32, %c0_i32_0 : i32, i32, i32
  }
}

</mosaic_0001>

<bundles_post_ra>
// kernel: tpu_custom_call.1
= control target key start
LH: loop header
LB: loop body
LE: loop exit
PB: predicated region body
PF: predicated region fallthrough
CT: control target
= control target key end

     0   :  { %11 = vsyncpa [#allocation3], 0  ;;  %s4680_s0 = inlined_call_operand.hbm [shape: f32[2,16,32], index: 0, kind: input, shape index: {}]   ;;  %s4681_s1 = inlined_call_operand.hbm [shape: bf16[32,32], index: 1, kind: input, shape index: {}]   ;;  %s4682_s2 = inlined_call_operand.hbm [shape: bf16[32,32], index: 2, kind: input, shape index: {}]   ;;  %s4683_s3 = inlined_call_operand.hbm [shape: bf16[32,32], index: 3, kind: input, shape index: {}]   ;;  %s4684_s4 = inlined_call_operand.hbm [shape: bf16[32,32], index: 4, kind: input, shape index: {}]   ;;  %s4685_s5 = inlined_call_operand.vmem [shape: f32[1,32], index: 5, kind: input, shape index: {}]   ;;  %s4686_s6 = inlined_call_operand.hbm [shape: f32[2,16,32], index: 6, kind: output, shape index: {}]  }
   0x1   :  { %13 = vsyncpa [#allocation3 + $0x1], 0 }
   0x2   :  { %14 = vsyncpa [#allocation6], 0 }
   0x3   :  { %15 = vsyncpa [#allocation9], 0 }
   0x4   :  { %16 = vsyncpa [#allocation4], 0 }
   0x5   :  { %18 = vsyncpa [#allocation4 + $0x1], 0  ;;  %s4042_s21 = smov 0   ;;  %s4044_s22 = smov 0  }
   0x6   :  { %s4046_s23 = smov 0   ;;  %s4048_s24 = smov 0  }
   0x7 LB: > { %s4063_s25 = sadd.s32 4294967295, %s3983_s24   ;;  %s3456_s26 = sadd.s32 4294967294, %s3983_s24   ;;  %s3983_s24 = sphi %s4048_s24, %s4709_s24   ;;  %s3979_s23 = sphi %s4046_s23, %s4708_s23   ;;  %s3975_s22 = sphi %s4044_s22, %s4707_s22   ;;  %s3971_s21 = sphi %s4042_s21, %s4706_s21  }
   0x8   : > { %p44_p0 = scmp.ne.s32.totalorder %s3975_s22, %s3971_s21  ;;  %p4687_p1 = scmp.eq.s32.totalorder %s4063_s25, 0 }
   0x9   : > { %p173_p2 = scmp.eq.s32.totalorder %s4063_s25, 1  ;;  %p179_p3 = scmp.eq.s32.totalorder %s3456_s26, 1 }
   0xa   : > { %p4072_p4 = por %p4687_p1, %p44_p0  ;;  %p3457_p5 = scmp.ge.s32.totalorder %s3983_s24, 1 }
   0xb   : > { %p4077_p6 = por %p179_p3, %p44_p0  ;;  %p186_p7 = scmp.lt.s32.totalorder %s3983_s24, 3 }
   0xc   : > { %s4691_s27 = scalar_select %p4072_p4, 1, 0 }
   0xd   : > { %s4692_s28 = scalar_select %p4077_p6, 1, 0 }
   0xe   : > { %p4082_p8 = pnand %p3457_p5, %p186_p7  ;;  %s3985_s30 = smov [#allocation5]  }
   0xf   : > { %s198_s7 = sshll.u32 %s3985_s30, 4  ;;  %s3986_s9 = smov [#allocation8]   ;;  %s199_s7 = int_to_ptr.vmem [resolvable:$true] %s198_s7 }
  0x10   : > { %s4693_s29 = scalar_select %p4082_p8, 1, 0 }
  0x11   : > { %p3641_p9 = pneg %p4082_p8  ;;  %s224_s10 = sshll.u32 %s3986_s9, 4  ;;  %s225_s10 = int_to_ptr.vmem [resolvable:$true] %s224_s10 }
  0x12   : > { %s3987_s11 = smov [#allocation7]   ;;  %s3790_s13 = scalar_lea.vmem %s199_s7, 256 }
  0x13   : > { %p4091_p11 = pnand %p3641_p9, %p4687_p1  ;;  %s211_s12 = sshll.u32 %s3987_s11, 4  ;;  %s212_s12 = int_to_ptr.vmem [resolvable:$true] %s211_s12 }
  0x14   : > { %p3791_p13 = scmp.ne.s32.totalorder %s199_s7, %s3790_s13  ;;  %p3798_p5 = scmp.lt.s32.totalorder %s199_s7, %s199_s7 }
  0x15   : > { %p3781_p12 = pneg %p4091_p11  ;;  %p3799_p7 = scmp.lt.s32.totalorder %s3790_s13, %s3790_s13 }
  0x17   : > { %p3793_p0 = pnand %p3791_p13, %p3781_p12  ;;  %p3800_p9 = por %p3799_p7, %p3798_p5 }
  0x19   : > { %p3794_p3 = pneg %p3793_p0 }
  0x1b   : > { %p3801_p10 = pnand %p3800_p9, %p3794_p3 }
  0x1d   : > { %3804 = shalt.err (!%p3801_p10)
}
  0x1e   : > { %s3988_s14 = smov 64   ;;  %s3989_s15 = smov 4  }
  0x1f   : > { %3644 = dma.hbm_to_vmem [thread:$0]  (!%p4091_p11), %s4681_s1, 256, %s199_s7, [#allocation6], %s3988_s14, %s3988_s14, %s3989_s15  }
  0x20   : > { %s3816_s18 = scalar_lea.vmem %s225_s10, 256  ;;  %p3824_p3 = scmp.lt.s32.totalorder %s225_s10, %s225_s10 }
  0x21   : > { %p3817_p13 = scmp.ne.s32.totalorder %s225_s10, %s3816_s18  ;;  %p3825_p10 = scmp.lt.s32.totalorder %s3816_s18, %s3816_s18 }
  0x23   : > { %p3819_p0 = pnand %p3817_p13, %p3781_p12  ;;  %p3826_p7 = por %p3825_p10, %p3824_p3 }
  0x25   : > { %p3820_p5 = pneg %p3819_p0 }
  0x27   : > { %p3827_p9 = pnand %p3826_p7, %p3820_p5 }
  0x29   : > { %3830 = shalt.err (!%p3827_p9)
}
  0x2a   : > { %3650 = dma.hbm_to_vmem [thread:$0]  (!%p4091_p11), %s4683_s3, 256, %s225_s10, [#allocation9], %s3988_s14, %s3988_s14, %s3989_s15  }
  0x2b   : > { %s3842_s26 = scalar_lea.vmem %s212_s12, 256  ;;  %p3850_p3 = scmp.lt.s32.totalorder %s212_s12, %s212_s12 }
  0x2c   : > { %p3843_p1 = scmp.ne.s32.totalorder %s212_s12, %s3842_s26  ;;  %p3851_p5 = scmp.lt.s32.totalorder %s3842_s26, %s3842_s26 }
  0x2e   : > { %p3845_p13 = pnand %p3843_p1, %p3781_p12  ;;  %p3852_p10 = por %p3851_p5, %p3850_p3 }
  0x30   : > { %p3846_p0 = pneg %p3845_p13 }
  0x32   : > { %p3853_p7 = pnand %p3852_p10, %p3846_p0 }
  0x34   : > { %3856 = shalt.err (!%p3853_p7)
}
  0x35   : > { %3647 = dma.hbm_to_vmem [thread:$0]  (!%p4091_p11), %s4682_s2, 256, %s212_s12, [#allocation6], %s3988_s14, %s3988_s14, %s3989_s15  }
  0x36   : > { %s3990_s9 = smov [#allocation10]  }
  0x37   : > { %s237_s10 = sshll.u32 %s3990_s9, 4  ;;  %s238_s10 = int_to_ptr.vmem [resolvable:$true] %s237_s10 }
  0x38   : > { %s3868_s11 = scalar_lea.vmem %s238_s10, 256  ;;  %p3876_p0 = scmp.lt.s32.totalorder %s238_s10, %s238_s10 }
  0x39   : > { %p3869_p1 = scmp.ne.s32.totalorder %s238_s10, %s3868_s11  ;;  %p3877_p3 = scmp.lt.s32.totalorder %s3868_s11, %s3868_s11 }
  0x3b   : > { %p3871_p9 = pnand %p3869_p1, %p3781_p12  ;;  %p3878_p5 = por %p3877_p3, %p3876_p0 }
  0x3d   : > { %p3872_p13 = pneg %p3871_p9 }
  0x3f   : > { %p3879_p10 = pnand %p3878_p5, %p3872_p13 }
  0x41   : > { %3882 = shalt.err (!%p3879_p10)
}
  0x42   : > { %3653 = dma.hbm_to_vmem [thread:$0]  (!%p4091_p11), %s4684_s4, 256, %s238_s10, [#allocation9], %s3988_s14, %s3988_s14, %s3989_s15  }
  0x43   : > { %s4142_s16 = sadd.s32 1, %s3983_s24   ;;  %s31_s8 = sadd.s32 1, %s3979_s23 }
  0x44   : > { %s28_s17 = ssub.s32 %s3983_s24, %s4142_s16  ;;  %p38_p12 = scmp.ne.s32.totalorder %s3979_s23, %s3975_s22 }
  0x45   : > { %p29_p7 = scmp.eq.s32.totalorder %s28_s17, 0  ;;  %p39_p1 = scmp.eq.s32.totalorder %s3983_s24, 0 }
  0x46   : > { %p4152_p9 = por %p173_p2, %p38_p12  ;;  %p3666_p13 = scmp.lt.s32.totalorder %s3983_s24, 2 }
  0x47   : > { %s4158_s19 = scalar_select %p29_p7, %s3979_s23, %s31_s8  }
  0x48   : > { %s4695_s18 = scalar_select %p4152_p9, 1, 0 }
  0x49   : > { %p40_p0 = por %p39_p1, %p38_p12  ;;  %s254_s20 = sand.u32 1, %s3979_s23  }
  0x4a   : > { %s3463_s26 = sshll.u32 %s254_s20, 4  ;;  %s3511_s14 = sshll.u32 %s3983_s24, 8 }
  0x4b   : > { %s4165_s7 = scalar_lea.hbm %s4680_s0, %s3511_s14  ;;  %s258_s9 = scalar_lea.vmem [#allocation2], %s3463_s26 }
  0x4c   : > { %s265_s10 = sshll.u32 %s258_s9, 4  ;;  %p4169_p2 = pnand %p3666_p13, %p40_p0  ;;  %s4167_s10 = int_to_ptr.vmem [resolvable:$true] %s265_s10 }
  0x4d   : > { %s4173_s12 = scalar_lea.sflag [#allocation3], %s254_s20  ;;  %s3883_s13 = scalar_lea.hbm %s4165_s7, 256 }
  0x4e   : > { %p3884_p11 = scmp.ne.s32.totalorder %s4165_s7, %s3883_s13  ;;  %p3885_p3 = pneg %p4169_p2 }
  0x4f   : > { %s3888_s26 = scalar_lea.hbm %s4680_s0, 512  ;;  %p3889_p12 = scmp.lt.s32.totalorder %s4165_s7, %s4680_s0 }
  0x50   : > { %p3886_p5 = pnand %p3885_p3, %p3884_p11  ;;  %p3890_p7 = scmp.lt.s32.totalorder %s3888_s26, %s3883_s13 }
  0x52   : > { %p3887_p10 = pneg %p3886_p5  ;;  %p3891_p1 = por %p3890_p7, %p3889_p12 }
  0x54   : > { %p3892_p13 = pnand %p3891_p1, %p3887_p10 }
  0x56   : > { %3895 = shalt.err (!%p3892_p13)
}
  0x57   : > { %s3896_s20 = scalar_lea.vmem %s4167_s10, 256  ;;  %s3991_s30 = smov [#allocation2]  }
  0x58   : > { %p3897_p0 = scmp.ne.s32.totalorder %s4167_s10, %s3896_s20  ;;  %s3901_s9 = sshll.u32 %s3991_s30, 4  ;;  %s3902_s9 = int_to_ptr.vmem [resolvable:$false] %s3901_s9 }
  0x59   : > { %s3903_s8 = scalar_lea.vmem %s3902_s9, 512  ;;  %p3904_p5 = scmp.lt.s32.totalorder %s4167_s10, %s3902_s9 }
  0x5a   : > { %p3899_p6 = pnand %p3897_p0, %p3885_p3  ;;  %p3905_p9 = scmp.lt.s32.totalorder %s3903_s8, %s3896_s20 }
  0x5c   : > { %p3900_p11 = pneg %p3899_p6  ;;  %p3906_p4 = por %p3905_p9, %p3904_p5 }
  0x5e   : > { %p3907_p8 = pnand %p3906_p4, %p3900_p11 }
  0x60   : > { %3910 = shalt.err (!%p3907_p8)
}
  0x61   : > { %s3992_s13 = smov 128   ;;  %s3993_s17 = smov 8  }
  0x62   : > { %3657 = dma.hbm_to_vmem [thread:$0]  (!%p4169_p2), %s4165_s7, 256, %s4167_s10, %s4173_s12, %s3992_s13, %s3992_s13, %s3993_s17  }
  0x63   : > { %p4697_p3 = scmp.ne.s32.totalorder %s4693_s29, 0 }
  0x64   : > { %s4197_s26 = sand.u32 (!%p4697_p3), 1, %s3975_s22   ;;  %p4698_p4 = scmp.ne.s32.totalorder (!%p4697_p3), %s4691_s27, 0 }
  0x65   : > { %277 = sbr.rel (%p4697_p3) target bundleno = 1967 (0x7af), region = 44  ;;  %s3467_s14 = sshll.u32 (!%p4697_p3), %s4197_s26, 4 }
  0x66   : > { %s280_s15 = scalar_lea.sflag (!%p4697_p3), [#allocation3], %s4197_s26  ;;  %s283_s20 = scalar_lea.vmem (!%p4697_p3), [#allocation2], %s3467_s14 }
  0x6a   : > { %3954 = dma.done.wait (%p4698_p4), %s280_s15, 256  }
  0x6b   : > { %3956 = vsyncadd (%p4698_p4), %s280_s15, 4294967040  ;;  %p4699_p6 = scmp.eq.s32.totalorder %s4063_s25, 0 }
  0x6d   : > { %3958 = dma.done.wait (%p4699_p6), [#allocation6], 512   ;;  %p4700_p8 = pmov %p4699_p6 }
  0x6e   : > { %p4701_p9 = pmov %p4699_p6 }
  0x6f   : > { %3960 = vsyncadd (%p4700_p8), [#allocation6], 4294966784 }
  0x70   : > { %3962 = dma.done.wait (%p4701_p9), [#allocation9], 512   ;;  %p4702_p2 = pmov %p4699_p6 }
  0x71   : > { %v3994_v0 = vmov 0.0   ;;  %vm3995_vm0 = vmmov 0   ;;  %v3739_v1 = vld [vmem:[#allocation7 + $0x8] sm:$0xff]   ;;  %v3740_v2 = vld [vmem:[#allocation7] sm:$0xff]   ;;  %v3741_v5 = vld [vmem:[#allocation5 + $0x8] sm:$0xff]   ;;  %vm348_vm1 = vcmask 261120   ;;  %v532_v20 = vlaneseq }
  0x72   : > { %3964 = vsyncadd (%p4702_p2), [#allocation9], 4294966784  ;;  %3549 = vmatprep.subr.bf16.mxu1 %v3994_v0  ;;  %3553 = vmatprep.mubr.msk.bf16.mxu1 %vm3995_vm0, %v3994_v0  ;;  %v329_v3 = vld [vmem:[%s283_s20] sm:$0xff]  ;;  %v330_v4 = vld [vmem:[%s283_s20 + $0x8] sm:$0xff]  ;;  %s3996_s27 = smov 112   ;;  %s3997_s29 = smov 120  }
  0x73   : > { %3541 = vmatprep.subr.bf16.mxu0 %v3994_v0  ;;  %3545 = vmatprep.mubr.msk.bf16.mxu0 %vm3995_vm0, %v3994_v0  ;;  %v3742_v6 = vld [vmem:[#allocation5] sm:$0xff]   ;;  %v331_v7 = vpack.c.bf16 %v330_v4, %v329_v3  ;;  %v3743_v8 = vld [vmem:[#allocation8 + $0x8] sm:$0xff]   ;;  %s3998_s7 = smov 104   ;;  %v3999_v18 = vmov 1983009808   ;;  %v533_v24 = vshrl.u32 %v532_v20, 7 }
  0x74   : > { %3550 = vmatpush3.bf16.msra.mxu1 %v3739_v1  ;;  %3542 = vmatpush3.bf16.msra.mxu0 %v3741_v5  ;;  %v3744_v9 = vld [vmem:[#allocation8] sm:$0xff]   ;;  %v530_v19 = vunpack.c.l.s4 %v3999_v18  ;;  %v4000_v21 = vmov 1934713408   ;;  %vm1737_vm2 = vcmask 1043456   ;;  %vm1733_vm3 = vcmask 64512   ;;  %s4002_s10 = smov 16  }
  0x75   : > { %3551 = vmatprep.subr.bf16.mxu1 %v3994_v0  ;;  %3543 = vmatprep.subr.bf16.mxu0 %v3994_v0  ;;  %v562_v22 = vunpack.c.l.s4 %v4000_v21  ;;  %vm1923_vm4 = vcmask 130048   ;;  %s4003_s11 = smov 8   ;;  %s4004_s12 = smov 24   ;;  %vm3258_vm5 = vcmask 195584  }
  0x76   : > { %v531_v23 = vunpack.c.0.s8 %v530_v19  ;;  %s327_s8 = scalar_lea.vmem [#allocation11], %s3467_s14  ;;  %s3512_s17 = sshll.u32 %s4063_s25, 8 }
  0x77   : > { %v563_v27 = vunpack.c.0.s8 %v562_v22  ;;  %s3345_s13 = sshll.u32 %s327_s8, 4  ;;  %s3332_s14 = scalar_lea.sflag [#allocation4], %s4197_s26  ;;  %s4630_s13 = int_to_ptr.vmem [resolvable:$true] %s3345_s13 }
  0x78   : > { %3552 = vmatpush3.bf16.msra.mxu1 %v3740_v2  ;;  %3544 = vmatpush3.bf16.msra.mxu0 %v3742_v6  ;;  %v4257_v28 = vsub.s32 %v531_v23, %v533_v24  ;;  %p4703_p12 = scmp.ne.s32.totalorder %s4695_s18, 0  ;;  %s4005_s25 = smov [#allocation11]  }
  0x79   : > { %3565 = vmatprep.subr.bf16.mxu1 %v3994_v0  ;;  %3557 = vmatprep.subr.bf16.mxu0 %v3994_v0  ;;  %v4259_v35 = vsub.s32 %v563_v27, %v533_v24 }
  0x7b   : > { %3554 = vmatmul.mubr.msk.bf16.vlgmr.msra.gmra.mxu1 %vm348_vm1, %v331_v7  ;;  %3546 = vmatmul.mubr.msk.bf16.vlgmr.msra.gmra.mxu0 %vm348_vm1, %v331_v7 }
  0x7c   : > { %3567 = vmatprep.mubr.msk.bf16.mxu1 %vm3995_vm0, %v3994_v0  ;;  %3561 = vmatprep.mubr.msk.bf16.mxu0 %vm3995_vm0, %v3994_v0 }
  0x7d   : > { %3558 = vmatpush3.bf16.msra.mxu0 %v3743_v8 }
  0x7e   : > { %3559 = vmatprep.subr.bf16.mxu0 %v3994_v0 }
  0x81   : > { %3560 = vmatpush3.bf16.msra.mxu0 %v3744_v9 }
  0x82   : > { %3571 = vmatprep.subr.bf16.mxu0 %v3994_v0 }
  0x84   : > { %3562 = vmatmul.mubr.msk.bf16.vlgmr.msra.gmra.mxu0 %vm348_vm1, %v331_v7 }
  0x85   : > { %3573 = vmatprep.mubr.msk.bf16.mxu0 %vm3995_vm0, %v3994_v0 }
 0x13b   : > { %v443_v10 = vpop.f32.mrf.mxu1  ;;  %v4238_v12 = vpop.f32.mrf.mxu0 }
 0x13c   : > { %671 = vrot.lane.b32.xlu1 %v443_v10, %s3996_s27  ;;  %665 = vrot.lane.b32.xlu0 %v443_v10, %s3997_s29 }
 0x13d   : > { %v3555_v11 = vpop.f32.mrf.mxu1  ;;  %v3547_v14 = vpop.f32.mrf.mxu0 }
 0x13f   : > { %v4240_v13 = vpop.f32.mrf.mxu1  ;;  %v4245_v16 = vpop.f32.mrf.mxu0 }
 0x140   : > { %677 = vrot.lane.b32.xlu0 %v443_v10, %s3998_s7  ;;  %673 = vrot.lane.b32.xlu1 %v4240_v13, %s3996_s27 }
 0x141   : > { %v3556_v15 = vpop.f32.mrf.mxu1  ;;  %v3548_v17 = vpop.f32.mrf.mxu0 }
 0x144   : > { %679 = vrot.lane.b32.xlu1 %v4240_v13, %s3998_s7  ;;  %667 = vrot.lane.b32.xlu0 %v4240_v13, %s3997_s29 }
 0x148   : > { %509 = vrot.lane.b32.xlu1 %v4238_v12, %s3997_s29  ;;  %511 = vrot.lane.b32.xlu0 %v4245_v16, %s3997_s29 }
 0x14c   : > { %515 = vrot.lane.b32.xlu1 %v4238_v12, %s3996_s27 }
 0x1ae   : > { %v672_v25 = vpop.permute.xlu1 %671  ;;  %v666_v26 = vpop.permute.xlu0 %665 }
 0x1af   : > { %v683_v29 = vcombine.low %v443_v10, %v672_v25  ;;  %v684_v30 = vcombine.high %v443_v10, %v672_v25 }
 0x1b1   : > { %v691_v36 = vrot.slane %v683_v29, %v4257_v28  ;;  %v698_v37 = vrot.slane %v684_v30, %v4257_v28  ;;  %v4291_v30 = vpop.f32.mrf.mxu0 }
 0x1b2   : > { %v678_v31 = vpop.permute.xlu0 %677  ;;  %v674_v32 = vpop.permute.xlu1 %673 }
 0x1b3   : > { %v699_v33 = vcombine.low %v666_v26, %v678_v31  ;;  %v700_v34 = vcombine.high %v666_v26, %v678_v31  ;;  %v751_v47 = vcombine.low %v4240_v13, %v674_v32  ;;  %v752_v62 = vcombine.high %v4240_v13, %v674_v32  ;;  %v3563_v31 = vpop.f32.mrf.mxu0 }
 0x1b5   : > { %v707_v38 = vrot.slane %v699_v33, %v4257_v28  ;;  %v714_v39 = vrot.slane %v700_v34, %v4257_v28  ;;  %v759_v55 = vrot.slane %v751_v47, %v4257_v28  ;;  %v766_v6 = vrot.slane %v752_v62, %v4257_v28  ;;  %v4295_v32 = vpop.f32.mrf.mxu0 }
 0x1b6   : > { %v680_v40 = vpop.permute.xlu1 %679  ;;  %v668_v41 = vpop.permute.xlu0 %667 }
 0x1b7   : > { %v767_v42 = vcombine.low %v668_v41, %v680_v40  ;;  %v731_v43 = vcombine.low %v698_v37, %v714_v39  ;;  %v715_v44 = vcombine.low %v691_v36, %v707_v38  ;;  %v732_v45 = vcombine.high %v698_v37, %v714_v39  ;;  %v3564_v33 = vpop.f32.mrf.mxu0 }
 0x1b8   : > { %v716_v46 = vcombine.high %v691_v36, %v707_v38  ;;  %v768_v56 = vcombine.high %v668_v41, %v680_v40 }
 0x1b9   : > { %v739_v48 = vrot.slane %v731_v43, %v4259_v35  ;;  %v723_v49 = vrot.slane %v715_v44, %v4259_v35  ;;  %v775_v50 = vrot.slane %v767_v42, %v4257_v28  ;;  %v746_v53 = vrot.slane %v732_v45, %v4259_v35 }
 0x1ba   : > { %v730_v54 = vrot.slane %v716_v46, %v4259_v35  ;;  %v782_v63 = vrot.slane %v768_v56, %v4257_v28  ;;  %v4297_v34 = vpop.permute.xlu1 %509  ;;  %v4301_v37 = vpop.permute.xlu0 %511 }
 0x1bb   : > { %v995_v51 = vpack.c.bf16 %v739_v48, %v739_v48  ;;  %v991_v52 = vpack.c.bf16 %v723_v49, %v723_v49  ;;  %v747_v57 = vcombine.high %v723_v49, %v3994_v0  ;;  %v997_v58 = vpack.c.bf16 %v746_v53, %v746_v53 }
 0x1bc   : > { %v993_v59 = vpack.c.bf16 %v730_v54, %v730_v54  ;;  %v748_v60 = vcombine.high %v730_v54, %v3994_v0  ;;  %v783_v61 = vcombine.low %v759_v55, %v775_v50  ;;  %v749_v1 = vcombine.high %v739_v48, %v3994_v0 }
 0x1bd   : > { %1183 = vxpose.xlu1.c.b16.start.end [1/1] (short) (narrow) %v995_v51, 16  ;;  %1119 = vxpose.xlu0.c.b16.start.end [1/1] (short) (narrow) %v991_v52, 16  ;;  %v992_v2 = vpack.c.bf16 %v747_v57, %v747_v57  ;;  %v784_v5 = vcombine.high %v759_v55, %v775_v50  ;;  %v750_v7 = vcombine.high %v746_v53, %v3994_v0 }
 0x1be   : > { %v994_v3 = vpack.c.bf16 %v748_v60, %v748_v60  ;;  %v791_v4 = vrot.slane %v783_v61, %v4259_v35  ;;  %v996_v9 = vpack.c.bf16 %v749_v1, %v749_v1  ;;  %v799_v11 = vcombine.low %v766_v6, %v782_v63  ;;  %v4299_v36 = vpop.permute.xlu1 %515 }
 0x1bf   : > { %v798_v10 = vrot.slane %v784_v5, %v4259_v35  ;;  %v998_v13 = vpack.c.bf16 %v750_v7, %v750_v7  ;;  %v800_v18 = vcombine.high %v766_v6, %v782_v63 }
 0x1c0   : > { %v999_v8 = vpack.c.bf16 %v791_v4, %v791_v4  ;;  %v807_v15 = vrot.slane %v799_v11, %v4259_v35  ;;  %v815_v17 = vcombine.high %v791_v4, %v3994_v0 }
 0x1c1   : > { %1215 = vxpose.xlu1.c.b16.start.end [1/1] (short) (narrow) %v997_v58, 16  ;;  %1151 = vxpose.xlu0.c.b16.start.end [1/1] (short) (narrow) %v993_v59, 16  ;;  %v1001_v14 = vpack.c.bf16 %v798_v10, %v798_v10  ;;  %v814_v21 = vrot.slane %v800_v18, %v4259_v35  ;;  %v816_v22 = vcombine.high %v798_v10, %v3994_v0 }
 0x1c2   : > { %v1003_v19 = vpack.c.bf16 %v807_v15, %v807_v15  ;;  %v1000_v20 = vpack.c.bf16 %v815_v17, %v815_v17  ;;  %v817_v25 = vcombine.high %v807_v15, %v3994_v0 }
 0x1c3   : > { %v1005_v23 = vpack.c.bf16 %v814_v21, %v814_v21  ;;  %v1002_v24 = vpack.c.bf16 %v816_v22, %v816_v22  ;;  %v818_v27 = vcombine.high %v814_v21, %v3994_v0 }
 0x1c4   : > { %v1004_v26 = vpack.c.bf16 %v817_v25, %v817_v25 }
 0x1c5   : > { %1135 = vxpose.xlu1.c.b16.start.end [1/1] (short) (narrow) %v992_v2, 16  ;;  %1167 = vxpose.xlu0.c.b16.start.end [1/1] (short) (narrow) %v994_v3, 16  ;;  %v1006_v29 = vpack.c.bf16 %v818_v27, %v818_v27 }
 0x1c9   : > { %1247 = vxpose.xlu1.c.b16.start.end [1/1] (short) (narrow) %v999_v8, 16  ;;  %1199 = vxpose.xlu0.c.b16.start.end [1/1] (short) (narrow) %v996_v9, 16 }
 0x1cd   : > { %1279 = vxpose.xlu1.c.b16.start.end [1/1] (short) (narrow) %v1001_v14, 16  ;;  %1231 = vxpose.xlu0.c.b16.start.end [1/1] (short) (narrow) %v998_v13, 16 }
 0x1d1   : > { %1311 = vxpose.xlu1.c.b16.start.end [1/1] (short) (narrow) %v1003_v19, 16  ;;  %1263 = vxpose.xlu0.c.b16.start.end [1/1] (short) (narrow) %v1000_v20, 16 }
 0x1d5   : > { %1343 = vxpose.xlu1.c.b16.start.end [1/1] (short) (narrow) %v1005_v23, 16  ;;  %1295 = vxpose.xlu0.c.b16.start.end [1/1] (short) (narrow) %v1002_v24, 16 }
 0x1d9   : > { %517 = vrot.lane.b32.xlu1 %v4245_v16, %s3996_s27  ;;  %1327 = vxpose.xlu0.c.b16.start.end [1/1] (short) (narrow) %v1004_v26, 16 }
 0x1dd   : > { %523 = vrot.lane.b32.xlu1 %v4245_v16, %s3998_s7  ;;  %1359 = vxpose.xlu0.c.b16.start.end [1/1] (short) (narrow) %v1006_v29, 16 }
 0x1e6   : > { %521 = vrot.lane.b32.xlu0 %v4238_v12, %s3998_s7 }
 0x21f   : > { %v1191_v38 = vpop.trf.xlu1  ;;  %v1127_v39 = vpop.trf.xlu0 }
 0x220   : > { %v1375_v56 = vcombine.low %v1127_v39, %v1191_v38 }
 0x222   : > { %v1382_v1 = vrot.slane %v1375_v56, %v4257_v28 }
 0x223   : > { %v1223_v40 = vpop.trf.xlu1  ;;  %v1159_v41 = vpop.trf.xlu0 }
 0x224   : > { %v1383_v53 = vcombine.low %v1159_v41, %v1223_v40 }
 0x226   : > { %v1390_v60 = vrot.slane %v1383_v53, %v4257_v28 }
 0x227   : > { %v1143_v42 = vpop.trf.xlu1  ;;  %v1175_v43 = vpop.trf.xlu0 }
 0x228   : > { %v1407_v7 = vcombine.low %v1382_v1, %v1390_v60  ;;  %v1408_v8 = vcombine.high %v1382_v1, %v1390_v60  ;;  %v528_v1 = vcombine.high %v4238_v12, %v4299_v36 }
 0x22a   : > { %v1415_v19 = vrot.slane %v1407_v7, %v4259_v35  ;;  %v1422_v20 = vrot.slane %v1408_v8, %v4259_v35  ;;  %v542_v7 = vrot.slane %v528_v1, %v4257_v28 }
 0x22b   : > { %v1255_v44 = vpop.trf.xlu1  ;;  %v1207_v45 = vpop.trf.xlu0 }
 0x22c   : > { %v1443_v58 = vcombine.low %v1143_v42, %v1207_v45 }
 0x22e   : > { %v1450_v3 = vrot.slane %v1443_v58, %v4257_v28 }
 0x22f   : > { %v1287_v46 = vpop.trf.xlu1  ;;  %v1239_v47 = vpop.trf.xlu0 }
 0x230   : > { %v1451_v54 = vcombine.low %v1175_v43, %v1239_v47 }
 0x232   : > { %v1458_v61 = vrot.slane %v1451_v54, %v4257_v28 }
 0x233   : > { %v1319_v48 = vpop.trf.xlu1  ;;  %v1271_v49 = vpop.trf.xlu0 }
 0x234   : > { %v1391_v55 = vcombine.low %v1255_v44, %v1319_v48  ;;  %v1475_v9 = vcombine.low %v1450_v3, %v1458_v61  ;;  %v1476_v10 = vcombine.high %v1450_v3, %v1458_v61 }
 0x236   : > { %v1398_v62 = vrot.slane %v1391_v55, %v4257_v28  ;;  %v1483_v21 = vrot.slane %v1475_v9, %v4259_v35  ;;  %v1490_v22 = vrot.slane %v1476_v10, %v4259_v35 }
 0x237   : > { %v1351_v50 = vpop.trf.xlu1  ;;  %v1303_v51 = vpop.trf.xlu0 }
 0x238   : > { %v1399_v52 = vcombine.low %v1287_v46, %v1351_v50 }
 0x23a   : > { %v1406_v59 = vrot.slane %v1399_v52, %v4257_v28 }
 0x23b   : > { %v1335_v57 = vpop.trf.xlu0 }
 0x23c   : > { %v1459_v63 = vcombine.low %v1271_v49, %v1335_v57  ;;  %v1423_v4 = vcombine.low %v1398_v62, %v1406_v59  ;;  %v1424_v5 = vcombine.high %v1398_v62, %v1406_v59 }
 0x23e   : > { %v1466_v11 = vrot.slane %v1459_v63, %v4257_v28  ;;  %v1431_v14 = vrot.slane %v1423_v4, %v4259_v35  ;;  %v1438_v15 = vrot.slane %v1424_v5, %v4259_v35  ;;  %v527_v63 = vcombine.low %v4238_v12, %v4299_v36 }
 0x23f   : > { %v1367_v2 = vpop.trf.xlu0 }
 0x240   : > { %v1467_v6 = vcombine.low %v1303_v51, %v1367_v2  ;;  %v1441_v25 = vcombine.low %v1422_v20, %v1438_v15  ;;  %v1439_v27 = vcombine.low %v1415_v19, %v1431_v14  ;;  %v1440_v41 = vcombine.high %v1415_v19, %v1431_v14 }
 0x241   : > { %v1442_v46 = vcombine.high %v1422_v20, %v1438_v15 }
 0x242   : > { %v1474_v13 = vrot.slane %v1467_v6, %v4257_v28  ;;  %v1515_v40 = vshrl.u32 %v1439_v27, 16  ;;  %v1523_v47 = vshrl.u32 %v1440_v41, 16  ;;  %v1531_v51 = vshrl.u32 %v1441_v25, 16 }
 0x243   : > { %v1539_v54 = vshrl.u32 %v1442_v46, 16 }
 0x244   : > { %v1491_v17 = vcombine.low %v1466_v11, %v1474_v13  ;;  %v1492_v18 = vcombine.high %v1466_v11, %v1474_v13 }
 0x246   : > { %v1499_v23 = vrot.slane %v1491_v17, %v4259_v35  ;;  %v1506_v24 = vrot.slane %v1492_v18, %v4259_v35 }
 0x248   : > { %v1509_v26 = vcombine.low %v1490_v22, %v1506_v24  ;;  %v1507_v29 = vcombine.low %v1483_v21, %v1499_v23  ;;  %v1508_v39 = vcombine.high %v1483_v21, %v1499_v23  ;;  %v1510_v44 = vcombine.high %v1490_v22, %v1506_v24 }
 0x24a   : > { %v1529_v31 = vpack.i.b16 %v1509_v26, %v1441_v25  ;;  %v1513_v33 = vpack.i.b16 %v1507_v29, %v1439_v27  ;;  %v1516_v38 = vshrl.u32 %v1507_v29, 16  ;;  %v1521_v43 = vpack.i.b16 %v1508_v39, %v1440_v41 }
 0x24b   : > { %v1524_v45 = vshrl.u32 %v1508_v39, 16  ;;  %v1537_v48 = vpack.i.b16 %v1510_v44, %v1442_v46  ;;  %v1532_v50 = vshrl.u32 %v1509_v26, 16  ;;  %v1540_v53 = vshrl.u32 %v1510_v44, 16  ;;  %v518_v56 = vpop.permute.xlu1 %517 }
 0x24c   : > { %1607 = vxpose.xlu1.c.b16.start.end [1/1] (short) (narrow) %v1529_v31, 16  ;;  %1543 = vxpose.xlu0.c.b16.start.end [1/1] (short) (narrow) %v1513_v33, 16  ;;  %v1517_v42 = vpack.i.b16 %v1516_v38, %v1515_v40  ;;  %v595_v2 = vcombine.low %v4245_v16, %v518_v56  ;;  %v596_v3 = vcombine.high %v4245_v16, %v518_v56 }
 0x24d   : > { %v1525_v49 = vpack.i.b16 %v1524_v45, %v1523_v47  ;;  %v1533_v52 = vpack.i.b16 %v1532_v50, %v1531_v51  ;;  %v1541_v55 = vpack.i.b16 %v1540_v53, %v1539_v54 }
 0x24e   : > { %v603_v8 = vrot.slane %v595_v2, %v4257_v28  ;;  %v610_v12 = vrot.slane %v596_v3, %v4257_v28 }
 0x24f   : > { %v524_v58 = vpop.permute.xlu1 %523 }
 0x250   : > { %1559 = vxpose.xlu1.c.b16.start.end [1/1] (short) (narrow) %v1517_v42, 16  ;;  %1575 = vxpose.xlu0.c.b16.start.end [1/1] (short) (narrow) %v1521_v43, 16  ;;  %v611_v61 = vcombine.low %v4301_v37, %v524_v58  ;;  %v612_v62 = vcombine.high %v4301_v37, %v524_v58  ;;  %v535_v37 = vrot.slane %v527_v63, %v4257_v28 }
 0x252   : > { %v626_v6 = vrot.slane %v612_v62, %v4257_v28 }
 0x254   : > { %1639 = vxpose.xlu1.c.b16.start.end [1/1] (short) (narrow) %v1537_v48, 16  ;;  %1591 = vxpose.xlu0.c.b16.start.end [1/1] (short) (narrow) %v1525_v49, 16  ;;  %v643_v14 = vcombine.low %v610_v12, %v626_v6  ;;  %v644_v15 = vcombine.high %v610_v12, %v626_v6 }
 0x256   : > { %v651_v23 = vrot.slane %v643_v14, %v4259_v35  ;;  %v658_v24 = vrot.slane %v644_v15, %v4259_v35 }
 0x258   : > { %821 = vrot.lane.b32.xlu1 %v4291_v30, %s3997_s29  ;;  %1623 = vxpose.xlu0.c.b16.start.end [1/1] (short) (narrow) %v1533_v52, 16  ;;  %v522_v57 = vpop.permute.xlu0 %521  ;;  %v661_v40 = vcombine.high %v651_v23, %v3994_v0  ;;  %v662_v41 = vcombine.high %v658_v24, %v3994_v0 }
 0x259   : > { %v543_v59 = vcombine.low %v4297_v34, %v522_v57  ;;  %v544_v60 = vcombine.high %v4297_v34, %v522_v57  ;;  %v619_v34 = vrot.slane %v611_v61, %v4257_v28 }
 0x25b   : > { %v551_v4 = vrot.slane %v543_v59, %v4257_v28  ;;  %v558_v5 = vrot.slane %v544_v60, %v4257_v28  ;;  %v627_v11 = vcombine.low %v603_v8, %v619_v34  ;;  %v628_v13 = vcombine.high %v603_v8, %v619_v34 }
 0x25c   : > { %827 = vrot.lane.b32.xlu1 %v4291_v30, %s3996_s27  ;;  %1655 = vxpose.xlu0.c.b16.start.end [1/1] (short) (narrow) %v1541_v55, 16 }
 0x25d   : > { %v559_v36 = vcombine.low %v535_v37, %v551_v4  ;;  %v560_v9 = vcombine.high %v535_v37, %v551_v4  ;;  %v575_v10 = vcombine.low %v542_v7, %v558_v5  ;;  %v576_v16 = vcombine.high %v542_v7, %v558_v5 }
 0x25e   : > { %v635_v21 = vrot.slane %v627_v11, %v4259_v35  ;;  %v642_v22 = vrot.slane %v628_v13, %v4259_v35 }
 0x25f   : > { %v567_v17 = vrot.slane %v559_v36, %v4259_v35  ;;  %v574_v18 = vrot.slane %v560_v9, %v4259_v35  ;;  %v583_v19 = vrot.slane %v575_v10, %v4259_v35  ;;  %v590_v20 = vrot.slane %v576_v16, %v4259_v35 }
 0x260   : > { %829 = vrot.lane.b32.xlu1 %v4295_v32, %s3996_s27  ;;  %v659_v38 = vcombine.high %v635_v21, %v3994_v0  ;;  %v660_v39 = vcombine.high %v642_v22, %v3994_v0  ;;  %v3484_v54 = vpack.c.bf16 %v651_v23, %v635_v21  ;;  %v3485_v55 = vpack.c.bf16 %v658_v24, %v642_v22  ;;  %s4635_s27 = scalar_lea.hbm %s4686_s6, %s3512_s17 }
 0x261   : > { %v591_v27 = vcombine.high %v567_v17, %v3994_v0  ;;  %v592_v29 = vcombine.high %v574_v18, %v3994_v0  ;;  %v593_v31 = vcombine.high %v583_v19, %v3994_v0  ;;  %v594_v33 = vcombine.high %v590_v20, %v3994_v0 }
 0x262   : > { %v3488_v46 = vpack.c.bf16 %v661_v40, %v659_v38  ;;  %v3489_v47 = vpack.c.bf16 %v662_v41, %v660_v39  ;;  %v3482_v49 = vpack.c.bf16 %v583_v19, %v567_v17  ;;  %v3483_v50 = vpack.c.bf16 %v590_v20, %v574_v18 }
 0x263   : > { %v3486_v44 = vpack.c.bf16 %v593_v31, %v591_v27  ;;  %v3487_v45 = vpack.c.bf16 %v594_v33, %v592_v29  ;;  %v1030_v2 = vrot.slane %v3484_v54, %v4257_v28  ;;  %v1038_v3 = vrot.slane %v3485_v55, %v4257_v28 }
 0x264   : > { %835 = vrot.lane.b32.xlu1 %v4295_v32, %s3998_s7  ;;  %v1080_v59 = vrot.slane %v3488_v46, %v4257_v28  ;;  %v1088_v60 = vrot.slane %v3489_v47, %v4257_v28  ;;  %v1014_v61 = vrot.slane %v3482_v49, %v4257_v28  ;;  %v1022_v62 = vrot.slane %v3483_v50, %v4257_v28 }
 0x265   : > { %823 = vrot.lane.b32.xlu0 %v4295_v32, %s3997_s29  ;;  %v1064_v56 = vrot.slane %v3486_v44, %v4257_v28  ;;  %v1072_v57 = vrot.slane %v3487_v45, %v4257_v28  ;;  %v1047_v12 = vcombine.low %v1030_v2, %v1038_v3  ;;  %v4001_v18 = vmov 0   ;;  %s3911_s29 = scalar_lea.vmem %s4630_s13, 256 }
 0x266   : > { %v1097_v6 = vcombine.low %v1080_v59, %v1088_v60  ;;  %v1039_v37 = vcombine.low %v1014_v61, %v1022_v62  ;;  %p3912_p10 = scmp.ne.s32.totalorder %s4630_s13, %s3911_s29 }
 0x267   : > { %v1089_v4 = vcombine.low %v1064_v56, %v1072_v57  ;;  %v1054_v15 = vrot.slane %v1047_v12, %v4259_v35 }
 0x268   : > { %v1046_v11 = vrot.slane %v1039_v37, %v4259_v35  ;;  %v1104_v13 = vrot.slane %v1097_v6, %v4259_v35  ;;  %p3913_p7 = pnand %p3912_p10, %p4703_p12 }
 0x269   : > { %833 = vrot.lane.b32.xlu0 %v4291_v30, %s3998_s7  ;;  %v1096_v9 = vrot.slane %v1089_v4, %v4259_v35  ;;  %s3915_s7 = sshll.u32 %s4005_s25, 4  ;;  %s3916_s7 = int_to_ptr.vmem [resolvable:$false] %s3915_s7 }
 0x26a   : > { %v1055_v21 = vcombine.low %v1046_v11, %v1054_v15  ;;  %v1056_v49 = vcombine.high %v1046_v11, %v1054_v15  ;;  %p3914_p1 = pneg %p3913_p7  ;;  %p3918_p13 = scmp.lt.s32.totalorder %s4630_s13, %s3916_s7 }
 0x26b   : > { %v1105_v17 = vcombine.low %v1096_v9, %v1104_v13  ;;  %v1106_v46 = vcombine.high %v1096_v9, %v1104_v13 }
 0x26d   : > { %v1109_v41 = vpack.i.b16 %v1105_v17, %v1055_v21  ;;  %v1117_v50 = vshrl.u32 %v1106_v46, 16 }
 0x2ae   : > { %v1615_v25 = vpop.trf.xlu1  ;;  %v1551_v26 = vpop.trf.xlu0 }
 0x2af   : > { %v1671_v51 = vcombine.low %v1551_v26, %v1615_v25  ;;  %v1111_v26 = vshrl.u32 %v1105_v17, 16 }
 0x2b1   : > { %v1678_v63 = vrot.slane %v1671_v51, %v4257_v28 }
 0x2b2   : > { %v1567_v42 = vpop.trf.xlu1  ;;  %v1583_v43 = vpop.trf.xlu0 }
 0x2b6   : > { %v1647_v48 = vpop.trf.xlu1  ;;  %v1599_v53 = vpop.trf.xlu0 }
 0x2b7   : > { %v1679_v52 = vcombine.low %v1583_v43, %v1647_v48 }
 0x2b9   : > { %v1686_v58 = vrot.slane %v1679_v52, %v4257_v28  ;;  %v1115_v52 = vpack.i.b16 %v1106_v46, %v1056_v49 }
 0x2ba   : > { %v1631_v1 = vpop.trf.xlu0 }
 0x2bb   : > { %v1687_v5 = vcombine.low %v1678_v63, %v1686_v58  ;;  %v1696_v34 = vcombine.low %v1567_v42, %v1631_v1  ;;  %v1110_v42 = vshrl.u32 %v1055_v21, 16 }
 0x2bd   : > { %v1694_v36 = vrot.slane %v1687_v5, %v4259_v35  ;;  %v1703_v10 = vrot.slane %v1696_v34, %v4257_v28  ;;  %v1112_v45 = vpack.i.b16 %v1111_v26, %v1110_v42 }
 0x2be   : > { %v1663_v7 = vpop.trf.xlu0 }
 0x2bf   : > { %v1704_v8 = vcombine.low %v1599_v53, %v1663_v7  ;;  %v1695_v19 = vcombine.high %v1694_v36, %v4001_v18  ;;  %v1724_v23 = vshrl.u32 %v1694_v36, 16  ;;  %v1116_v53 = vshrl.u32 %v1056_v49, 16 }
 0x2c1   : > { %v1711_v16 = vrot.slane %v1704_v8, %v4257_v28  ;;  %v1730_v27 = vshrl.u32 %v1695_v19, 16  ;;  %v1118_v55 = vpack.i.b16 %v1117_v50, %v1116_v53 }
 0x2c3   : > { %v1712_v14 = vcombine.low %v1703_v10, %v1711_v16 }
 0x2c5   : > { %v1719_v20 = vrot.slane %v1712_v14, %v4259_v35 }
 0x2c7   : > { %v1723_v22 = vpack.i.b16 %v1719_v20, %v1694_v36  ;;  %v1725_v24 = vshrl.u32 %v1719_v20, 16  ;;  %v1720_v25 = vcombine.high %v1719_v20, %v4001_v18 }
 0x2c9   : > { %v1739_v29 = vsel %vm1737_vm2, %v1723_v22, 0  ;;  %v1726_v31 = vpack.i.b16 %v1725_v24, %v1724_v23  ;;  %v1729_v33 = vpack.i.b16 %v1720_v25, %v1695_v19  ;;  %v1731_v38 = vshrl.u32 %v1720_v25, 16 }
 0x2ca   : > { %v822_v39 = vpop.permute.xlu1 %821  ;;  %3566 = vmatpush3.bf16.msra.mxu1 %v1739_v29 }
 0x2cb   : > { %v1786_v40 = vsel %vm1737_vm2, %v1726_v31, 0  ;;  %3577 = vmatprep.subr.bf16.mxu1 %v3994_v0  ;;  %v1732_v43 = vpack.i.b16 %v1731_v38, %v1730_v27  ;;  %v1833_v44 = vsel %vm1737_vm2, %v1729_v33, 0 }
 0x2cc   : > { %3572 = vmatpush3.bf16.msra.mxu0 %v1786_v40 }
 0x2cd   : > { %3568 = vmatmul.mubr.msk.bf16.vlgmr.msra.gmra.mxu1 %vm1733_vm3, %v1109_v41  ;;  %3583 = vmatprep.subr.bf16.mxu0 %v3994_v0  ;;  %v1880_v48 = vsel %vm1737_vm2, %v1732_v43, 0 }
 0x2ce   : > { %v828_v47 = vpop.permute.xlu1 %827  ;;  %3578 = vmatpush3.bf16.msra.mxu1 %v1833_v44  ;;  %3579 = vmatprep.mubr.msk.bf16.mxu1 %vm3995_vm0, %v3994_v0 }
 0x2cf   : > { %3574 = vmatmul.mubr.msk.bf16.vlgmr.msra.gmra.mxu0 %vm1733_vm3, %v1112_v45  ;;  %3589 = vmatprep.subr.bf16.mxu1 %v3994_v0  ;;  %v839_v58 = vcombine.low %v4291_v30, %v828_v47  ;;  %v840_v59 = vcombine.high %v4291_v30, %v828_v47 }
 0x2d0   : > { %3584 = vmatpush3.bf16.msra.mxu0 %v1880_v48  ;;  %3585 = vmatprep.mubr.msk.bf16.mxu0 %vm3995_vm0, %v3994_v0 }
 0x2d1   : > { %3595 = vmatprep.subr.bf16.mxu0 %v3994_v0  ;;  %v847_v63 = vrot.slane %v839_v58, %v4257_v28  ;;  %v854_v2 = vrot.slane %v840_v59, %v4257_v28 }
 0x2d2   : > { %v830_v51 = vpop.permute.xlu1 %829 }
 0x2d3   : > { %v908_v54 = vcombine.high %v4295_v32, %v830_v51  ;;  %v907_v37 = vcombine.low %v4295_v32, %v830_v51 }
 0x2d5   : > { %3580 = vmatmul.mubr.msk.bf16.vlgmr.msra.gmra.mxu1 %vm1733_vm3, %v1115_v52  ;;  %v4407_v60 = vrot.slane %v908_v54, %v4257_v28  ;;  %v915_v16 = vrot.slane %v907_v37, %v4257_v28 }
 0x2d6   : > { %v836_v56 = vpop.permute.xlu1 %835  ;;  %3591 = vmatprep.mubr.msk.bf16.mxu1 %vm3995_vm0, %v3994_v0 }
 0x2d7   : > { %3586 = vmatmul.mubr.msk.bf16.vlgmr.msra.gmra.mxu0 %vm1733_vm3, %v1118_v55  ;;  %v824_v57 = vpop.permute.xlu0 %823 }
 0x2d8   : > { %v924_v61 = vcombine.high %v824_v57, %v836_v56  ;;  %3597 = vmatprep.mubr.msk.bf16.mxu0 %vm3995_vm0, %v3994_v0  ;;  %v923_v7 = vcombine.low %v824_v57, %v836_v56 }
 0x2da   : > { %v4412_v62 = vrot.slane %v924_v61, %v4257_v28  ;;  %v931_v11 = vrot.slane %v923_v7, %v4257_v28 }
 0x2db   : > { %v834_v1 = vpop.permute.xlu0 %833 }
 0x2dc   : > { %v855_v3 = vcombine.low %v822_v39, %v834_v1  ;;  %v856_v4 = vcombine.high %v822_v39, %v834_v1  ;;  %v955_v30 = vcombine.low %v4407_v60, %v4412_v62  ;;  %v956_v5 = vcombine.high %v4407_v60, %v4412_v62 }
 0x2dd   : > { %v939_v23 = vcombine.low %v915_v16, %v931_v11  ;;  %v940_v33 = vcombine.high %v915_v16, %v931_v11 }
 0x2de   : > { %v863_v34 = vrot.slane %v855_v3, %v4257_v28  ;;  %v870_v6 = vrot.slane %v856_v4, %v4257_v28 }
 0x2df   : > { %v947_v27 = vrot.slane %v939_v23, %v4259_v35  ;;  %v954_v40 = vrot.slane %v940_v33, %v4259_v35 }
 0x2e0   : > { %v871_v8 = vcombine.low %v847_v63, %v863_v34  ;;  %v872_v12 = vcombine.high %v847_v63, %v863_v34  ;;  %v887_v36 = vcombine.low %v854_v2, %v870_v6  ;;  %v888_v17 = vcombine.high %v854_v2, %v870_v6 }
 0x2e1   : > { %v2024_v38 = vpack.c.bf16 %v947_v27, %v947_v27  ;;  %v971_v41 = vcombine.high %v947_v27, %v3994_v0  ;;  %v2026_v42 = vpack.c.bf16 %v954_v40, %v954_v40  ;;  %v972_v44 = vcombine.high %v954_v40, %v3994_v0 }
 0x2e2   : > { %v879_v9 = vrot.slane %v871_v8, %v4259_v35  ;;  %v886_v10 = vrot.slane %v872_v12, %v4259_v35  ;;  %v895_v15 = vrot.slane %v887_v36, %v4259_v35  ;;  %v902_v22 = vrot.slane %v888_v17, %v4259_v35 }
 0x2e3   : > { %v2025_v43 = vpack.c.bf16 %v971_v41, %v971_v41  ;;  %v2027_v45 = vpack.c.bf16 %v972_v44, %v972_v44  ;;  %v963_v8 = vrot.slane %v955_v30, %v4259_v35  ;;  %v970_v36 = vrot.slane %v956_v5, %v4259_v35 }
 0x2e4   : > { %v2016_v13 = vpack.c.bf16 %v879_v9, %v879_v9  ;;  %v903_v14 = vcombine.high %v879_v9, %v3994_v0  ;;  %v2018_v19 = vpack.c.bf16 %v886_v10, %v886_v10  ;;  %v904_v20 = vcombine.high %v886_v10, %v3994_v0 }
 0x2e5   : > { %v2020_v21 = vpack.c.bf16 %v895_v15, %v895_v15  ;;  %v905_v25 = vcombine.high %v895_v15, %v3994_v0  ;;  %v2022_v26 = vpack.c.bf16 %v902_v22, %v902_v22  ;;  %v906_v31 = vcombine.high %v902_v22, %v3994_v0 }
 0x2e6   : > { %2032 = vxpose.xlu0.c.b16.start.end [1/1] (short) (narrow) %v2016_v13, 16  ;;  %v2017_v32 = vpack.c.bf16 %v903_v14, %v903_v14  ;;  %v2019_v24 = vpack.c.bf16 %v904_v20, %v904_v20  ;;  %v2028_v12 = vpack.c.bf16 %v963_v8, %v963_v8  ;;  %v973_v9 = vcombine.high %v963_v8, %v3994_v0 }
 0x2e7   : > { %v2021_v29 = vpack.c.bf16 %v905_v25, %v905_v25  ;;  %v2023_v39 = vpack.c.bf16 %v906_v31, %v906_v31  ;;  %v2030_v10 = vpack.c.bf16 %v970_v36, %v970_v36  ;;  %v974_v11 = vcombine.high %v970_v36, %v3994_v0 }
 0x2e8   : > { %2048 = vxpose.xlu1.c.b16.start.end [1/1] (short) (narrow) %v2017_v32, 16  ;;  %v2029_v16 = vpack.c.bf16 %v973_v9, %v973_v9 }
 0x2e9   : > { %v2031_v13 = vpack.c.bf16 %v974_v11, %v974_v11 }
 0x2ea   : > { %2064 = vxpose.xlu0.c.b16.start.end [1/1] (short) (narrow) %v2018_v19, 16 }
 0x2ec   : > { %2096 = vxpose.xlu1.c.b16.start.end [1/1] (short) (narrow) %v2020_v21, 16 }
 0x2ee   : > { %2080 = vxpose.xlu0.c.b16.start.end [1/1] (short) (narrow) %v2019_v24, 16 }
 0x2f0   : > { %2128 = vxpose.xlu1.c.b16.start.end [1/1] (short) (narrow) %v2022_v26, 16 }
 0x2f2   : > { %2112 = vxpose.xlu0.c.b16.start.end [1/1] (short) (narrow) %v2021_v29, 16 }
 0x2f4   : > { %2160 = vxpose.xlu1.c.b16.start.end [1/1] (short) (narrow) %v2024_v38, 16 }
 0x2f6   : > { %2144 = vxpose.xlu0.c.b16.start.end [1/1] (short) (narrow) %v2023_v39, 16 }
 0x2f8   : > { %2192 = vxpose.xlu1.c.b16.start.end [1/1] (short) (narrow) %v2026_v42, 16 }
 0x2fa   : > { %2176 = vxpose.xlu0.c.b16.start.end [1/1] (short) (narrow) %v2025_v43, 16 }
 0x2fe   : > { %2208 = vxpose.xlu0.c.b16.start.end [1/1] (short) (narrow) %v2027_v45, 16 }
 0x348   : > { %v2040_v14 = vpop.trf.xlu0 }
 0x34a   : > { %v2056_v30 = vpop.trf.xlu1 }
 0x34c   : > { %v2072_v15 = vpop.trf.xlu0 }
 0x34e   : > { %v2104_v32 = vpop.trf.xlu1 }
 0x34f   : > { %v2288_v33 = vcombine.low %v2040_v14, %v2104_v32 }
 0x350   : > { %v2088_v17 = vpop.trf.xlu0 }
 0x351   : > { %v2295_v44 = vrot.slane %v2288_v33, %v4257_v28 }
 0x352   : > { %v2136_v20 = vpop.trf.xlu1 }
 0x353   : > { %v2296_v38 = vcombine.low %v2072_v15, %v2136_v20 }
 0x354   : > { %v2120_v19 = vpop.trf.xlu0 }
 0x355   : > { %v2356_v41 = vcombine.low %v2056_v30, %v2120_v19  ;;  %v2303_v45 = vrot.slane %v2296_v38, %v4257_v28 }
 0x356   : > { %v2168_v62 = vpop.trf.xlu1 }
 0x358   : > { %v2152_v60 = vpop.trf.xlu0 }
 0x359   : > { %v2364_v42 = vcombine.low %v2088_v17, %v2152_v60 }
 0x35a   : > { %v2200_v21 = vpop.trf.xlu1 }
 0x35c   : > { %v2184_v5 = vpop.trf.xlu0 }
 0x360   : > { %v2216_v22 = vpop.trf.xlu0 }
 0x38d   : > { %v4437_v46 = vpop.f32.mrf.mxu1 }
 0x38e   : > { %v1924_v47 = vsel %vm1923_vm4, %v4437_v46, -inf }
 0x38f   : > { %v3569_v48 = vpop.f32.mrf.mxu1  ;;  %1925 = vmax.xlane.f32.xlu1 %v1924_v47  ;;  %v4441_v49 = vpop.f32.mrf.mxu0 }
 0x390   : > { %v1930_v53 = vsel %vm1923_vm4, %v4441_v49, -inf }
 0x391   : > { %v4443_v50 = vpop.f32.mrf.mxu1  ;;  %v3575_v51 = vpop.f32.mrf.mxu0 }
 0x392   : > { %v1927_v52 = vsel %vm1923_vm4, %v4443_v50, -inf }
 0x393   : > { %v3570_v54 = vpop.f32.mrf.mxu1  ;;  %1928 = vmax.xlane.f32.xlu0 %v1927_v52  ;;  %1931 = vmax.xlane.f32.xlu1 %v1930_v53  ;;  %v4449_v55 = vpop.f32.mrf.mxu0  ;;  %v2363_v52 = vrot.slane %v2356_v41, %v4257_v28  ;;  %v2371_v53 = vrot.slane %v2364_v42, %v4257_v28 }
 0x394   : > { %v1933_v59 = vsel %vm1923_vm4, %v4449_v55, -inf }
 0x395   : > { %v3576_v56 = vpop.f32.mrf.mxu0  ;;  %v4451_v57 = vpop.f32.mrf.mxu1  ;;  %v2389_v9 = vcombine.high %v2363_v52, %v2371_v53 }
 0x396   : > { %v1936_v58 = vsel %vm1923_vm4, %v4451_v57, -inf }
 0x397   : > { %v3581_v61 = vpop.f32.mrf.mxu1  ;;  %1937 = vmax.xlane.f32.xlu1 %v1936_v58  ;;  %1934 = vmax.xlane.f32.xlu0 %v1933_v59  ;;  %v4457_v63 = vpop.f32.mrf.mxu0  ;;  %v2321_v59 = vcombine.high %v2295_v44, %v2303_v45  ;;  %v2403_v20 = vrot.slane %v2389_v9, %v4259_v35 }
 0x398   : > { %v1942_v4 = vsel %vm1923_vm4, %v4457_v63, -inf }
 0x399   : > { %v4459_v1 = vpop.f32.mrf.mxu1  ;;  %v3587_v2 = vpop.f32.mrf.mxu0 }
 0x39a   : > { %v1939_v3 = vsel %vm1923_vm4, %v4459_v1, -inf  ;;  %v2320_v2 = vcombine.low %v2295_v44, %v2303_v45 }
 0x39b   : > { %v3582_v34 = vpop.f32.mrf.mxu1  ;;  %1940 = vmax.xlane.f32.xlu0 %v1939_v3  ;;  %1943 = vmax.xlane.f32.xlu1 %v1942_v4  ;;  %v4465_v6 = vpop.f32.mrf.mxu0 }
 0x39c   : > { %v1945_v7 = vsel %vm1923_vm4, %v4465_v6, -inf }
 0x39d   : > { %v3588_v37 = vpop.f32.mrf.mxu0 }
 0x39e   : > { %v2388_v37 = vcombine.low %v2363_v52, %v2371_v53 }
 0x39f   : > { %1946 = vmax.xlane.f32.xlu0 %v1945_v7 }
 0x3a0   : > { %v2396_v30 = vrot.slane %v2388_v37, %v4259_v35 }
 0x3c8   : > { %2224 = vxpose.xlu1.c.b16.start.end [1/1] (short) (narrow) %v2028_v12, 16 }
 0x3cc   : > { %2256 = vxpose.xlu1.c.b16.start.end [1/1] (short) (narrow) %v2030_v10, 16  ;;  %2240 = vxpose.xlu0.c.b16.start.end [1/1] (short) (narrow) %v2029_v16, 16  ;;  %v2335_v10 = vrot.slane %v2321_v59, %v4259_v35 }
 0x3d0   : > { %2272 = vxpose.xlu0.c.b16.start.end [1/1] (short) (narrow) %v2031_v13, 16  ;;  %v2328_v13 = vrot.slane %v2320_v2, %v4259_v35 }
 0x418   : > { %v1926_v23 = vpop.xlane.xlu1 %1925 }
 0x419   : > { %v1948_v19 = vsub.f32 %v4437_v46, %v1926_v23 }
 0x41b   : > { %v1956_v41 = vmul.f32 1.442695, %v1948_v19 }
 0x41c   : > { %v4479_v24 = vpop.xlane.xlu0 %1928  ;;  %v4481_v25 = vpop.xlane.xlu1 %1931 }
 0x41d   : > { %v1950_v23 = vsub.f32 %v4441_v49, %v4481_v25  ;;  %3747 = vpow2.f32 %v1956_v41 }
 0x420   : > { %v4483_v26 = vpop.xlane.xlu1 %1937  ;;  %v4485_v27 = vpop.xlane.xlu0 %1934 }
 0x424   : > { %v4487_v29 = vpop.xlane.xlu0 %1940  ;;  %v4489_v31 = vpop.xlane.xlu1 %1943 }
 0x425   : > { %v1953_v59 = vsub.f32 %v4459_v1, %v4487_v29  ;;  %v1954_v2 = vsub.f32 %v4457_v63, %v4489_v31 }
 0x428   : > { %v4491_v39 = vpop.xlane.xlu0 %1946 }
 0x42a   : > { %v2232_v40 = vpop.trf.xlu1  ;;  %v3748_v29 = vpop.eup %3747 }
 0x42b   : > { %v2304_v43 = vcombine.low %v2168_v62, %v2232_v40  ;;  %v1972_v37 = vsel %vm1923_vm4, %v3748_v29, 0.0 }
 0x42d   : > { %v2311_v54 = vrot.slane %v2304_v43, %v4257_v28 }
 0x42e   : > { %v2264_v47 = vpop.trf.xlu1  ;;  %v2248_v48 = vpop.trf.xlu0 }
 0x42f   : > { %v2312_v51 = vcombine.low %v2200_v21, %v2264_v47  ;;  %v2372_v58 = vcombine.low %v2184_v5, %v2248_v48  ;;  %v1949_v5 = vsub.f32 %v4443_v50, %v4479_v24  ;;  %v1951_v48 = vsub.f32 %v4449_v55, %v4485_v27 }
 0x431   : > { %v2319_v56 = vrot.slane %v2312_v51, %v4257_v28  ;;  %v2379_v7 = vrot.slane %v2372_v58, %v4257_v28  ;;  %v1958_v45 = vmul.f32 1.442695, %v1949_v5  ;;  %v1962_v58 = vmul.f32 1.442695, %v1951_v48 }
 0x432   : > { %v2280_v61 = vpop.trf.xlu0 }
 0x433   : > { %v2336_v3 = vcombine.low %v2311_v54, %v2319_v56  ;;  %v2337_v4 = vcombine.high %v2311_v54, %v2319_v56  ;;  %v2380_v34 = vcombine.low %v2216_v22, %v2280_v61  ;;  %v1960_v54 = vmul.f32 1.442695, %v1950_v23 }
 0x434   : > { %v1952_v56 = vsub.f32 %v4451_v57, %v4483_v26  ;;  %3749 = vpow2.f32 %v1958_v45  ;;  %v1966_v57 = vmul.f32 1.442695, %v1953_v59  ;;  %v1955_v26 = vsub.f32 %v4465_v6, %v4491_v39 }
 0x435   : > { %v2387_v8 = vrot.slane %v2380_v34, %v4257_v28  ;;  %v2344_v12 = vrot.slane %v2336_v3, %v4259_v35  ;;  %v2351_v36 = vrot.slane %v2337_v4, %v4259_v35  ;;  %3751 = vpow2.f32 %v1960_v54 }
 0x436   : > { %v1964_v27 = vmul.f32 1.442695, %v1952_v56  ;;  %3753 = vpow2.f32 %v1962_v58  ;;  %v1968_v4 = vmul.f32 1.442695, %v1954_v2  ;;  %v1970_v1 = vmul.f32 1.442695, %v1955_v26 }
 0x437   : > { %v2404_v16 = vcombine.low %v2379_v7, %v2387_v8  ;;  %v2405_v11 = vcombine.high %v2379_v7, %v2387_v8  ;;  %v4505_v14 = vcombine.high %v2335_v10, %v2351_v36  ;;  %v2352_v15 = vcombine.low %v2328_v13, %v2344_v12 }
 0x438   : > { %v2353_v40 = vcombine.high %v2328_v13, %v2344_v12  ;;  %v2354_v53 = vcombine.low %v2335_v10, %v2351_v36  ;;  %3755 = vpow2.f32 %v1964_v27 }
 0x439   : > { %v2412_v17 = vrot.slane %v2404_v16, %v4259_v35  ;;  %v2419_v32 = vrot.slane %v2405_v11, %v4259_v35  ;;  %v2428_v33 = vshrl.u32 %v2352_v15, 16  ;;  %v2452_v43 = vshrl.u32 %v4505_v14, 16 }
 0x43a   : > { %v2436_v52 = vshrl.u32 %v2353_v40, 16  ;;  %v2444_v55 = vshrl.u32 %v2354_v53, 16  ;;  %3757 = vpow2.f32 %v1966_v57 }
 0x43b   : > { %v2420_v60 = vcombine.low %v2396_v30, %v2412_v17  ;;  %v2421_v62 = vcombine.high %v2396_v30, %v2412_v17  ;;  %v4514_v21 = vcombine.high %v2403_v20, %v2419_v32  ;;  %v2422_v24 = vcombine.low %v2403_v20, %v2419_v32 }
 0x43c   : > { %3759 = vpow2.f32 %v1968_v4 }
 0x43d   : > { %v2426_v22 = vpack.i.b16 %v2420_v60, %v2352_v15  ;;  %v2429_v38 = vshrl.u32 %v2420_v60, 16  ;;  %v2450_v42 = vpack.i.b16 %v4514_v21, %v4505_v14  ;;  %v2453_v46 = vshrl.u32 %v4514_v21, 16 }
 0x43e   : > { %v2437_v50 = vshrl.u32 %v2421_v62, 16  ;;  %v2434_v51 = vpack.i.b16 %v2421_v62, %v2353_v40  ;;  %v2445_v25 = vshrl.u32 %v2422_v24, 16  ;;  %v2442_v61 = vpack.i.b16 %v2422_v24, %v2354_v53 }
 0x43f   : > { %2456 = vxpose.xlu1.c.b16.start.end [1/1] (short) (narrow) %v2426_v22, 16  ;;  %v2430_v44 = vpack.i.b16 %v2429_v38, %v2428_v33  ;;  %v2454_v47 = vpack.i.b16 %v2453_v46, %v2452_v43  ;;  %3761 = vpow2.f32 %v1970_v1 }
 0x440   : > { %v2438_v49 = vpack.i.b16 %v2437_v50, %v2436_v52  ;;  %v2446_v3 = vpack.i.b16 %v2445_v25, %v2444_v55 }
 0x441   : > { %2472 = vxpose.xlu0.c.b16.start.end [1/1] (short) (narrow) %v2430_v44, 16  ;;  %v3750_v34 = vpop.eup %3749 }
 0x442   : > { %v3752_v7 = vpop.eup %3751  ;;  %v1975_v63 = vsel %vm1923_vm4, %v3750_v34, 0.0 }
 0x443   : > { %2488 = vxpose.xlu1.c.b16.start.end [1/1] (short) (narrow) %v2434_v51, 16  ;;  %v3754_v31 = vpop.eup %3753  ;;  %v1978_v8 = vsel %vm1923_vm4, %v3752_v7, 0.0 }
 0x444   : > { %v1981_v39 = vsel %vm1923_vm4, %v3754_v31, 0.0 }
 0x445   : > { %2504 = vxpose.xlu0.c.b16.start.end [1/1] (short) (narrow) %v2438_v49, 16  ;;  %v4535_v6 = vpop.eup %3755 }
 0x446   : > { %v1984_v36 = vsel %vm1923_vm4, %v4535_v6, 0.0 }
 0x447   : > { %2520 = vxpose.xlu1.c.b16.start.end [1/1] (short) (narrow) %v2442_v61, 16  ;;  %v4538_v12 = vpop.eup %3757 }
 0x448   : > { %v1987_v10 = vsel %vm1923_vm4, %v4538_v12, 0.0 }
 0x449   : > { %2536 = vxpose.xlu0.c.b16.start.end [1/1] (short) (narrow) %v2446_v3, 16  ;;  %v4542_v9 = vpop.eup %3759 }
 0x44a   : > { %v1990_v11 = vsel %vm1923_vm4, %v4542_v9, 0.0 }
 0x44c   : > { %v4546_v16 = vpop.eup %3761 }
 0x44d   : > { %v1993_v13 = vsel %vm1923_vm4, %v4546_v16, 0.0 }
 0x454   : > { %1973 = vadd.xlane.f32.xlu1 %v1972_v37 }
 0x456   : > { %1976 = vadd.xlane.f32.xlu0 %v1975_v63 }
 0x458   : > { %1979 = vadd.xlane.f32.xlu1 %v1978_v8 }
 0x45a   : > { %1982 = vadd.xlane.f32.xlu0 %v1981_v39 }
 0x45c   : > { %1985 = vadd.xlane.f32.xlu1 %v1984_v36 }
 0x45e   : > { %1988 = vadd.xlane.f32.xlu0 %v1987_v10 }
 0x460   : > { %1991 = vadd.xlane.f32.xlu1 %v1990_v11 }
 0x462   : > { %1994 = vadd.xlane.f32.xlu0 %v1993_v13 }
 0x48d   : > { %2552 = vxpose.xlu1.c.b16.start.end [1/1] (short) (narrow) %v2450_v42, 16 }
 0x48f   : > { %2568 = vxpose.xlu0.c.b16.start.end [1/1] (short) (narrow) %v2454_v47, 16 }
 0x4a1   : > { %v2464_v15 = vpop.trf.xlu1 }
 0x4a3   : > { %v2480_v30 = vpop.trf.xlu0 }
 0x4a5   : > { %v2496_v17 = vpop.trf.xlu1 }
 0x4a7   : > { %v2512_v32 = vpop.trf.xlu0 }
 0x4a9   : > { %v2528_v19 = vpop.trf.xlu1 }
 0x4aa   : > { %v2584_v42 = vcombine.low %v2464_v15, %v2528_v19 }
 0x4ab   : > { %v2544_v20 = vpop.trf.xlu0 }
 0x4ac   : > { %v2609_v50 = vcombine.low %v2480_v30, %v2544_v20  ;;  %v2591_v48 = vrot.slane %v2584_v42, %v4257_v28 }
 0x4ae   : > { %v2616_v58 = vrot.slane %v2609_v50, %v4257_v28 }
 0x4dd   : > { %v1974_v60 = vpop.xlane.xlu1 %1973 }
 0x4de   : > { %3763 = vrcp.f32 %v1974_v60 }
 0x4df   : > { %v1977_v62 = vpop.xlane.xlu0 %1976 }
 0x4e0   : > { %3765 = vrcp.f32 %v1977_v62 }
 0x4e1   : > { %v1980_v5 = vpop.xlane.xlu1 %1979 }
 0x4e2   : > { %3767 = vrcp.f32 %v1980_v5 }
 0x4e3   : > { %v1983_v22 = vpop.xlane.xlu0 %1982 }
 0x4e4   : > { %3769 = vrcp.f32 %v1983_v22 }
 0x4e5   : > { %v1986_v33 = vpop.xlane.xlu1 %1985 }
 0x4e6   : > { %3771 = vrcp.f32 %v1986_v33 }
 0x4e7   : > { %v1989_v38 = vpop.xlane.xlu0 %1988 }
 0x4e8   : > { %3773 = vrcp.f32 %v1989_v38 }
 0x4e9   : > { %v1992_v14 = vpop.xlane.xlu1 %1991 }
 0x4ea   : > { %3775 = vrcp.f32 %v1992_v14 }
 0x4eb   : > { %v3764_v21 = vpop.eup %3763  ;;  %v1995_v40 = vpop.xlane.xlu0 %1994 }
 0x4ec   : > { %3777 = vrcp.f32 %v1995_v40  ;;  %v2004_v43 = vmul.f32 %v3764_v21, %v3748_v29 }
 0x4ed   : > { %v3766_v41 = vpop.eup %3765 }
 0x4ee   : > { %v2005_v46 = vmul.f32 %v3766_v41, %v3750_v34 }
 0x4ef   : > { %v3768_v23 = vpop.eup %3767  ;;  %v2560_v44 = vpop.trf.xlu1 }
 0x4f0   : > { %v2592_v24 = vcombine.low %v2496_v17, %v2560_v44  ;;  %v2012_v45 = vpack.c.bf16 %v2005_v46, %v2004_v43  ;;  %v2006_v52 = vmul.f32 %v3768_v23, %v3752_v7 }
 0x4f1   : > { %v3770_v47 = vpop.eup %3769  ;;  %v2576_v51 = vpop.trf.xlu0 }
 0x4f2   : > { %v2599_v53 = vrot.slane %v2592_v24, %v4257_v28  ;;  %v2617_v54 = vcombine.low %v2512_v32, %v2576_v51  ;;  %v2650_v56 = vsel %vm1923_vm4, %v2012_v45, 0  ;;  %v2007_v49 = vmul.f32 %v3770_v47, %v3754_v31 }
 0x4f3   : > { %v3772_v25 = vpop.eup %3771  ;;  %3590 = vmatpush3.bf16.xpose.msra.mxu1 %v2650_v56 }
 0x4f4   : > { %v2600_v59 = vcombine.low %v2591_v48, %v2599_v53  ;;  %v2624_v61 = vrot.slane %v2617_v54, %v4257_v28  ;;  %v2013_v55 = vpack.c.bf16 %v2007_v49, %v2006_v52  ;;  %3601 = vmatprep.subr.bf16.mxu1 %v3994_v0  ;;  %v2008_v2 = vmul.f32 %v3772_v25, %v4535_v6 }
 0x4f5   : > { %v3774_v27 = vpop.eup %3773 }
 0x4f6   : > { %v2607_v3 = vrot.slane %v2600_v59, %v4259_v35  ;;  %v2625_v57 = vcombine.low %v2616_v58, %v2624_v61  ;;  %v2696_v26 = vsel %vm1923_vm4, %v2013_v55, 0  ;;  %v2009_v4 = vmul.f32 %v3774_v27, %v4538_v12 }
 0x4f7   : > { %3596 = vmatpush3.bf16.xpose.msra.mxu0 %v2696_v26  ;;  %v3776_v1 = vpop.eup %3775 }
 0x4f8   : > { %v2632_v29 = vrot.slane %v2625_v57, %v4259_v35  ;;  %v2014_v34 = vpack.c.bf16 %v2009_v4, %v2008_v2  ;;  %3607 = vmatprep.subr.bf16.mxu0 %v3994_v0  ;;  %v2637_v7 = vshrl.u32 %v2607_v3, 16  ;;  %v2010_v6 = vmul.f32 %v3776_v1, %v4542_v9 }
 0x4f9   : > { %v3778_v37 = vpop.eup %3777  ;;  %v2608_v11 = vcombine.high %v2607_v3, %v4001_v18 }
 0x4fa   : > { %v2636_v63 = vpack.i.b16 %v2632_v29, %v2607_v3  ;;  %v2638_v31 = vshrl.u32 %v2632_v29, 16  ;;  %v2742_v8 = vsel %vm1923_vm4, %v2014_v34, 0  ;;  %v2011_v39 = vmul.f32 %v3778_v37, %v4546_v16 }
 0x4fb   : > { %v2633_v36 = vcombine.high %v2632_v29, %v4001_v18  ;;  %v2643_v15 = vshrl.u32 %v2608_v11, 16 }
 0x4fc   : > { %3592 = vmatmul.mubr.msk.bf16.vlgmr.msra.gmra.mxu1 %vm1923_vm4, %v2636_v63  ;;  %v2639_v12 = vpack.i.b16 %v2638_v31, %v2637_v7  ;;  %v2015_v10 = vpack.c.bf16 %v2011_v39, %v2010_v6 }
 0x4fd   : > { %3602 = vmatpush3.bf16.xpose.msra.mxu1 %v2742_v8  ;;  %3603 = vmatprep.mubr.msk.bf16.mxu1 %vm3995_vm0, %v3994_v0  ;;  %v2644_v16 = vshrl.u32 %v2633_v36, 16  ;;  %v2642_v13 = vpack.i.b16 %v2633_v36, %v2608_v11 }
 0x4fe   : > { %3598 = vmatmul.mubr.msk.bf16.vlgmr.msra.gmra.mxu0 %vm1923_vm4, %v2639_v12  ;;  %3613 = vmatprep.subr.bf16.mxu1 %v3994_v0  ;;  %v2788_v9 = vsel %vm1923_vm4, %v2015_v10, 0 }
 0x4ff   : > { %3609 = vmatprep.mubr.msk.bf16.mxu0 %vm3995_vm0, %v3994_v0  ;;  %3608 = vmatpush3.bf16.xpose.msra.mxu0 %v2788_v9  ;;  %v2645_v30 = vpack.i.b16 %v2644_v16, %v2643_v15 }
 0x504   : > { %3604 = vmatmul.mubr.msk.bf16.vlgmr.msra.gmra.mxu1 %vm1923_vm4, %v2642_v13 }
 0x505   : > { %3617 = vmatprep.mubr.msk.bf16.mxu1 %vm3995_vm0, %v3994_v0 }
 0x506   : > { %3610 = vmatmul.mubr.msk.bf16.vlgmr.msra.gmra.mxu0 %vm1923_vm4, %v2645_v30 }
 0x5bc   : > { %v2686_v17 = vpop.f32.mrf.mxu1 }
 0x5bd   : > { %2830 = vxpose.xlu1.b32.start.end [1/1] (short) (narrow) %v2686_v17, 16 }
 0x5be   : > { %v3593_v18 = vpop.f32.mrf.mxu1  ;;  %v2732_v32 = vpop.f32.mrf.mxu0 }
 0x5bf   : > { %2862 = vxpose.xlu0.b32.start.end [1/1] (short) (narrow) %v2732_v32, 16 }
 0x5c0   : > { %v2689_v19 = vpop.f32.mrf.mxu1  ;;  %v3599_v20 = vpop.f32.mrf.mxu0 }
 0x5c2   : > { %v3594_v60 = vpop.f32.mrf.mxu1  ;;  %v2735_v62 = vpop.f32.mrf.mxu0 }
 0x5c4   : > { %v3600_v5 = vpop.f32.mrf.mxu0  ;;  %v2778_v22 = vpop.f32.mrf.mxu1 }
 0x5c5   : > { %2894 = vxpose.xlu0.b32.start.end [1/1] (short) (narrow) %v2778_v22, 16 }
 0x5c6   : > { %v3605_v33 = vpop.f32.mrf.mxu1  ;;  %v2824_v38 = vpop.f32.mrf.mxu0 }
 0x5c7   : > { %2926 = vxpose.xlu1.b32.start.end [1/1] (short) (narrow) %v2824_v38, 16 }
 0x5c8   : > { %v2781_v14 = vpop.f32.mrf.mxu1  ;;  %v3611_v21 = vpop.f32.mrf.mxu0 }
 0x5ca   : > { %v3606_v40 = vpop.f32.mrf.mxu1  ;;  %v2827_v41 = vpop.f32.mrf.mxu0 }
 0x5cb   : > { %v3745_v40 = vld [vmem:[#allocation10 + $0x8] sm:$0xff]  }
 0x5cc   : > { %v3612_v42 = vpop.f32.mrf.mxu0  ;;  %3614 = vmatpush3.bf16.msra.mxu1 %v3745_v40 }
 0x5cd   : > { %3615 = vmatprep.subr.bf16.mxu1 %v3994_v0 }
 0x639   : > { %v2846_v43 = vpop.trf.xlu1 }
 0x63b   : > { %v2878_v46 = vpop.trf.xlu0 }
 0x63d   : > { %v2847_v23 = vpop.trf.xlu1 }
 0x63f   : > { %v2879_v44 = vpop.trf.xlu0 }
 0x643   : > { %v2910_v50 = vpop.trf.xlu0  ;;  %v2942_v47 = vpop.trf.xlu1 }
 0x644   : > { %v2958_v24 = vcombine.low %v2846_v43, %v2910_v50  ;;  %v2959_v45 = vcombine.high %v2846_v43, %v2910_v50  ;;  %v2974_v48 = vcombine.low %v2878_v46, %v2942_v47  ;;  %v2975_v51 = vcombine.high %v2878_v46, %v2942_v47 }
 0x646   : > { %v2966_v52 = vrot.slane %v2958_v24, %v4257_v28  ;;  %v2973_v53 = vrot.slane %v2959_v45, %v4257_v28  ;;  %v2982_v54 = vrot.slane %v2974_v48, %v4257_v28  ;;  %v2989_v56 = vrot.slane %v2975_v51, %v4257_v28  ;;  %v3746_v51 = vld [vmem:[#allocation10] sm:$0xff]  }
 0x647   : > { %v2911_v49 = vpop.trf.xlu0  ;;  %v2943_v59 = vpop.trf.xlu1  ;;  %3616 = vmatpush3.bf16.msra.mxu1 %v3746_v51 }
 0x648   : > { %v3026_v25 = vcombine.low %v2847_v23, %v2911_v49  ;;  %v3027_v58 = vcombine.high %v2847_v23, %v2911_v49  ;;  %v2990_v61 = vcombine.low %v2966_v52, %v2982_v54  ;;  %v2991_v55 = vcombine.high %v2966_v52, %v2982_v54 }
 0x649   : > { %v3006_v27 = vcombine.low %v2973_v53, %v2989_v56  ;;  %v3007_v2 = vcombine.high %v2973_v53, %v2989_v56  ;;  %v3042_v26 = vcombine.low %v2879_v44, %v2943_v59  ;;  %v3043_v4 = vcombine.high %v2879_v44, %v2943_v59 }
 0x64a   : > { %v3034_v3 = vrot.slane %v3026_v25, %v4257_v28  ;;  %v3041_v57 = vrot.slane %v3027_v58, %v4257_v28  ;;  %v2998_v1 = vrot.slane %v2990_v61, %v4259_v35  ;;  %v3005_v29 = vrot.slane %v2991_v55, %v4259_v35 }
 0x64b   : > { %v3014_v34 = vrot.slane %v3006_v27, %v4259_v35  ;;  %v3021_v37 = vrot.slane %v3007_v2, %v4259_v35  ;;  %v3050_v7 = vrot.slane %v3042_v26, %v4257_v28  ;;  %v3057_v63 = vrot.slane %v3043_v4, %v4257_v28 }
 0x64c   : > { %v3094_v31 = vcombine.low %v2998_v1, %v3005_v29  ;;  %v3498_v8 = vcombine.high %v2998_v1, %v3005_v29 }
 0x64d   : > { %v3110_v6 = vcombine.low %v3014_v34, %v3021_v37  ;;  %v3499_v39 = vcombine.high %v3014_v34, %v3021_v37  ;;  %v3058_v12 = vcombine.low %v3034_v3, %v3050_v7  ;;  %v3059_v36 = vcombine.high %v3034_v3, %v3050_v7 }
 0x64e   : > { %v3074_v10 = vcombine.low %v3041_v57, %v3057_v63  ;;  %v3075_v11 = vcombine.high %v3041_v57, %v3057_v63  ;;  %v3101_v9 = vrot.slane %v3094_v31, %v4257_v28  ;;  %v3109_v16 = vrot.slane %v3498_v8, %v4257_v28 }
 0x64f   : > { %v3117_v13 = vrot.slane %v3110_v6, %v4257_v28  ;;  %v3125_v15 = vrot.slane %v3499_v39, %v4257_v28  ;;  %v3066_v30 = vrot.slane %v3058_v12, %v4259_v35  ;;  %v3073_v17 = vrot.slane %v3059_v36, %v4259_v35  ;;  %v3502_v36 = vld [vmem:[%s4685_s5] ss:$0 sm:$0xff] }
 0x650   : > { %v3082_v18 = vrot.slane %v3074_v10, %v4259_v35  ;;  %v3089_v32 = vrot.slane %v3075_v11, %v4259_v35  ;;  %v3127_v19 = vcombine.high %v3101_v9, %v3109_v16  ;;  %v3126_v60 = vcombine.low %v3101_v9, %v3109_v16 }
 0x651   : > { %v3143_v20 = vcombine.high %v3117_v13, %v3125_v15  ;;  %v3142_v62 = vcombine.low %v3117_v13, %v3125_v15  ;;  %v3162_v5 = vcombine.low %v3066_v30, %v3073_v17  ;;  %v3500_v22 = vcombine.high %v3066_v30, %v3073_v17 }
 0x652   : > { %v3178_v33 = vcombine.low %v3082_v18, %v3089_v32  ;;  %v3501_v38 = vcombine.high %v3082_v18, %v3089_v32  ;;  %v3134_v14 = vrot.slane %v3126_v60, %v4259_v35  ;;  %v3141_v23 = vrot.slane %v3127_v19, %v4259_v35 }
 0x653   : > { %v3150_v21 = vrot.slane %v3142_v62, %v4259_v35  ;;  %v3169_v41 = vrot.slane %v3162_v5, %v4257_v28  ;;  %v3177_v42 = vrot.slane %v3500_v22, %v4257_v28  ;;  %v3157_v44 = vrot.slane %v3143_v20, %v4259_v35 }
 0x654   : > { %v3185_v43 = vrot.slane %v3178_v33, %v4257_v28  ;;  %v3193_v46 = vrot.slane %v3501_v38, %v4257_v28 }
 0x655   : > { %v3158_v50 = vcombine.low %v3134_v14, %v3150_v21  ;;  %v3195_v24 = vcombine.high %v3169_v41, %v3177_v42  ;;  %v3194_v47 = vcombine.low %v3169_v41, %v3177_v42  ;;  %v3160_v56 = vcombine.low %v3141_v23, %v3157_v44 }
 0x656   : > { %v3211_v45 = vcombine.high %v3185_v43, %v3193_v46  ;;  %v3210_v48 = vcombine.low %v3185_v43, %v3193_v46  ;;  %v3159_v25 = vcombine.high %v3134_v14, %v3150_v21  ;;  %v3161_v0 = vcombine.high %v3141_v23, %v3157_v44 }
 0x657   : > { %v3209_v52 = vrot.slane %v3195_v24, %v4259_v35  ;;  %v3202_v54 = vrot.slane %v3194_v47, %v4259_v35 }
 0x658   : > { %v3225_v53 = vrot.slane %v3211_v45, %v4259_v35  ;;  %v3218_v28 = vrot.slane %v3210_v48, %v4259_v35 }
 0x65a   : > { %v3228_v49 = vcombine.low %v3209_v52, %v3225_v53  ;;  %v3227_v58 = vcombine.high %v3202_v54, %v3218_v28  ;;  %v3226_v59 = vcombine.low %v3202_v54, %v3218_v28  ;;  %v3229_v27 = vcombine.high %v3209_v52, %v3225_v53 }
 0x65c   : > { %v3729_v61 = vpack.i.bf16 %v3228_v49, %v3160_v56  ;;  %v3724_v55 = vpack.i.bf16 %v3227_v58, %v3159_v25  ;;  %v3734_v2 = vpack.i.bf16 %v3229_v27, %v3161_v0 }
 0x65e   : > { %3730 = vrot.lane.b32.xlu1 %v3729_v61, %s4002_s10  ;;  %3725 = vrot.lane.b32.xlu0 %v3724_v55, %s4003_s11  ;;  %s3917_s10 = scalar_lea.vmem %s3916_s7, 512 }
 0x65f   : > { %p3919_p0 = scmp.lt.s32.totalorder %s3917_s10, %s3911_s29 }
 0x661   : > { %p3920_p11 = por %p3919_p0, %p3918_p13 }
 0x662   : > { %3735 = vrot.lane.b32.xlu1 %v3734_v2, %s4004_s12 }
 0x663   : > { %p3921_p5 = pnand %p3920_p11, %p3914_p1 }
 0x6d0   : > { %v3731_v3 = vpop.permute.xlu1 %3730  ;;  %v3726_v35 = vpop.permute.xlu0 %3725 }
 0x6d1   : > { %v3728_v57 = vunpack.i.h.bf16 %v3726_v35  ;;  %v3727_v26 = vunpack.i.l.bf16 %v3726_v35  ;;  %v3733_v4 = vunpack.i.h.bf16 %v3731_v3  ;;  %v3732_v1 = vunpack.i.l.bf16 %v3731_v3 }
 0x6d3   : > { %v3254_v29 = vsel %vm1733_vm3, %v3158_v50, %v3727_v26  ;;  %v3255_v34 = vsel %vm1733_vm3, %v3226_v59, %v3728_v57 }
 0x6d4   : > { %v3736_v37 = vpop.permute.xlu1 %3735  ;;  %v3256_v31 = vsel %vm1923_vm4, %v3254_v29, %v3732_v1  ;;  %v3257_v8 = vsel %vm1923_vm4, %v3255_v34, %v3733_v4 }
 0x6d5   : > { %v3738_v7 = vunpack.i.h.bf16 %v3736_v37  ;;  %v3737_v63 = vunpack.i.l.bf16 %v3736_v37 }
 0x6d7   : > { %v3259_v6 = vsel %vm3258_vm5, %v3256_v31, %v3737_v63  ;;  %v3260_v39 = vsel %vm3258_vm5, %v3257_v8, %v3738_v7 }
 0x6d8   : > { %v3261_v12 = vpack.c.bf16 %v3260_v39, %v3259_v6 }
 0x6da   : > { %3618 = vmatmul.mubr.msk.bf16.vlgmr.msra.gmra.mxu1 %vm348_vm1, %v3261_v12 }
 0x79a   : > { %v3322_v10 = vpop.f32.mrf.mxu1 }
 0x79b   : > { %v3323_v11 = vadd.f32 %v3502_v36, %v3322_v10 }
 0x79c   : > { %v3619_v9 = vpop.f32.mrf.mxu1 }
 0x79d   : > { %3329 = vst.msk [vmem:[%s327_s8] sm:$0xff] %vm348_vm1, %v3323_v11 }
 0x79e   : > { %v3325_v16 = vpop.f32.mrf.mxu1 }
 0x79f   : > { %v3326_v13 = vadd.f32 %v3502_v36, %v3325_v16 }
 0x7a0   : > { %v3620_v15 = vpop.f32.mrf.mxu1 }
 0x7a1   : > { %3330 = vst.msk [vmem:[%s327_s8 + $0x8] sm:$0xff] %vm348_vm1, %v3326_v13 }
 0x7a2   : > { %3924 = shalt.err (!%p3921_p5)
}
 0x7a3   : > { %s3925_s12 = scalar_lea.hbm %s4635_s27, 256  ;;  %s3929_s8 = scalar_lea.hbm %s4686_s6, 512 }
 0x7a4   : > { %p3926_p3 = scmp.ne.s32.totalorder %s4635_s27, %s3925_s12  ;;  %p3930_p8 = scmp.lt.s32.totalorder %s4635_s27, %s4686_s6 }
 0x7a5   : > { %p3931_p9 = scmp.lt.s32.totalorder %s3929_s8, %s3925_s12 }
 0x7a6   : > { %p3927_p4 = pnand %p3926_p3, %p4703_p12 }
 0x7a7   : > { %p3932_p2 = por %p3931_p9, %p3930_p8 }
 0x7a8   : > { %p3928_p6 = pneg %p3927_p4 }
 0x7aa   : > { %p3933_p10 = pnand %p3932_p2, %p3928_p6 }
 0x7ac   : > { %3936 = shalt.err (!%p3933_p10)
}
 0x7ad   : > { %s4006_s20 = smov 128  }
 0x7ae   : > { %3639 = dma.vmem_to_hbm [thread:$0]  (%p4703_p12), %s4630_s13, 256, %s4635_s27, %s3332_s14, %s4006_s20, %s4006_s20, %s4003_s11  }
 0x7af PF: > { %s3360_s29 = sand.u32 1, %s3971_s21   ;;  %p4704_p7 = scmp.ne.s32.totalorder %s4692_s28, 0 }
 0x7b0   : > { %p4705_p1 = scmp.ge.s32.totalorder %s3983_s24, 2  ;;  %s3361_s25 = scalar_lea.sflag [#allocation4], %s3360_s29 }
 0x7b2   : > { %p3659_p13 = pnand %p4705_p1, %p4704_p7 }
 0x7b4   : > { %p3660_p0 = pneg %p3659_p13 }
 0x7b6   : > { %3966 = dma.done.wait (%p3660_p0), %s3361_s25, 256  }
 0x7b7   : > { %3968 = vsyncadd (%p3660_p0), %s3361_s25, 4294967040  ;;  %p21_p11 = scmp.ge.s32.totalorder %s4142_s16, 4   ;;  %s4706_s21 = smov %s3975_s22 }
 0x7b8   : > { %s4707_s22 = smov %s3979_s23  ;;  %s4708_s23 = smov %s4158_s19 }
 0x7b9   : > { %s4709_s24 = smov %s4142_s16  ;;  %23 = sbr.rel (!%p21_p11) target bundleno = 7 (0x7), region = 105 }
 0x7be   :  { %3366 = vsyncpa [#allocation3], 1 }
 0x7bf   :  { %3368 = vsyncpa [#allocation3 + $0x1], 1 }
 0x7c0   :  { %3369 = vsyncpa [#allocation6], 1 }
 0x7c1   :  { %3370 = vsyncpa [#allocation9], 1 }
 0x7c2   :  { %3371 = vsyncpa [#allocation4], 1 }
 0x7c3   :  { %3373 = vsyncpa [#allocation4 + $0x1], 1 }

</bundles_post_ra>
